<compile_context>
chip_gen: v7x
topology: tpu7x:2x2x1
jax: 0.10.0
libtpu: 0.0.40
codegen_flags: <defaults>
</compile_context>

<pallas_src>
import jax
import jax.numpy as jnp
from jax import lax
from jax.experimental import pallas as pl
from jax.experimental.pallas import tpu as pltpu


def _fused_lstm_kernel(ids_ref, emb_ref, w_ih_ref, w_hh_ref, b_ref,
                       w_ffn_ref, b_ffn_ref, out_ref, x_scr, xp_scr):
    """ids_ref: SMEM (B, T) int32 (scalar prefetch); emb_ref: (V, Ep) f32;
    w_ih_ref: (Ep, 4Hp) bf16; w_hh_ref: (Hp, 4Hp) bf16; b_ref: (1, 4Hp) f32;
    w_ffn_ref: (Hp, 128) f32; b_ffn_ref: (1, 128) f32;
    out_ref: (Bp, 128) f32 (column 0 = ffn(h_n));
    x_scr: (T*Bp, Ep) f32 gathered embeddings (time-major, batch padded);
    xp_scr: (T*Bp, 4Hp) f32 hoisted input projection."""
    B, T = ids_ref.shape
    Bp = out_ref.shape[0]
    Hp = w_hh_ref.shape[0]

    # ---- Embedding gather: token rows -> time-major slab, padded rows zero.
    x_scr[...] = jnp.zeros_like(x_scr)
    for t in range(T):            # T*B = 16 tiny row copies, unrolled at trace
        for b in range(B):
            tok = ids_ref[b, t]
            x_scr[pl.ds(t * Bp + b, 1), :] = emb_ref[pl.ds(tok, 1), :]

    # ---- Hoisted input projection for ALL timesteps (one MXU pass), bias
    # folded in once, off the serial critical path. bf16 operands, f32 acc.
    xp_scr[...] = (
        jnp.dot(x_scr[...].astype(jnp.bfloat16), w_ih_ref[...],
                preferred_element_type=jnp.float32)
        + b_ref[...])                                            # (T*Bp, 4Hp)

    # ---- Serial recurrence. w_hh_ref is read inside the dot each step so the
    # RHS stays on the MXU feed path instead of occupying vregs across steps.
    def step(t, carry):
        h, c = carry                                             # (Bp, Hp) f32
        row = pl.multiple_of(t * Bp, Bp)                         # 8-aligned
        gates = xp_scr[pl.ds(row, Bp), :] + jnp.dot(
            h.astype(jnp.bfloat16), w_hh_ref[...],
            preferred_element_type=jnp.float32)                  # (Bp, 4Hp)
        # Gate order [i | f | o | g]; Hp = 128 -> lane-aligned slices.
        sig = jax.nn.sigmoid(gates[:, :3 * Hp])                  # one EUP pass
        i_g = sig[:, 0 * Hp:1 * Hp]
        f_g = sig[:, 1 * Hp:2 * Hp]
        o_g = sig[:, 2 * Hp:3 * Hp]
        g_g = jnp.tanh(gates[:, 3 * Hp:4 * Hp])
        c_new = f_g * c + i_g * g_g
        h_new = o_g * jnp.tanh(c_new)
        return h_new, c_new

    h0 = jnp.zeros((Bp, Hp), jnp.float32)
    c0 = jnp.zeros((Bp, Hp), jnp.float32)
    h_n, _ = lax.fori_loop(0, T, step, (h0, c0), unroll=True)

    # ---- Fused FFN epilogue: lane-dense (Bp, 128) store, f32 for parity.
    out_ref[...] = (jnp.dot(h_n, w_ffn_ref[...],
                            preferred_element_type=jnp.float32)
                    + b_ffn_ref[...])


def fused_forward_pallas(x_ids, emb_p, w_ih_t, w_hh_t, b_gates,
                         w_ffn_p, b_ffn_p):
    """x_ids: (B, T) int32. Returns (Bp, 128) f32; column 0 holds ffn(h_n)."""
    b, t = x_ids.shape
    bp = ((b + 7) // 8) * 8
    ep = emb_p.shape[1]
    hp, g4 = w_hh_t.shape
    grid_spec = pltpu.PrefetchScalarGridSpec(
        num_scalar_prefetch=1,                 # x_ids -> SMEM
        grid=(),                               # single invocation, all resident
        in_specs=[pl.BlockSpec(memory_space=pltpu.MemorySpace.VMEM)
                  for _ in range(6)],
        out_specs=pl.BlockSpec(memory_space=pltpu.MemorySpace.VMEM),
        scratch_shapes=[pltpu.VMEM((t * bp, ep), jnp.float32),
                        pltpu.VMEM((t * bp, g4), jnp.float32)],
    )
    return pl.pallas_call(
        _fused_lstm_kernel,
        out_shape=jax.ShapeDtypeStruct((bp, 128), jnp.float32),
        grid_spec=grid_spec,
    )(x_ids, emb_p, w_ih_t, w_hh_t, b_gates, w_ffn_p, b_ffn_p)


def prepare_params(embedding_matrix, w_ih, w_hh, b_ih, b_hh, w_ffn, b_ffn):
    """PyTorch-layout params -> padded / transposed / gate-reordered kernel
    params. Gate order is permuted [i,f,g,o] -> [i,f,o,g]; padded gate columns
    keep exactly-zero weights AND bias (invariant for padded-h correctness)."""
    four_h, e = w_ih.shape
    h = four_h // 4
    hp = ((h + 127) // 128) * 128
    ep = ((e + 127) // 128) * 128
    pad_h, pad_e = hp - h, ep - e
    perm = jnp.array([0, 1, 3, 2])             # [i,f,g,o] -> [i,f,o,g]

    emb_p = jnp.pad(embedding_matrix.astype(jnp.float32),
                    ((0, 0), (0, pad_e)))                       # (V, Ep) f32

    w_ih_g = jnp.pad(w_ih.reshape(4, h, e)[perm],
                     ((0, 0), (0, pad_h), (0, pad_e)))
    w_ih_t = jnp.transpose(w_ih_g, (2, 0, 1)).reshape(ep, 4 * hp)

    w_hh_g = jnp.pad(w_hh.reshape(4, h, h)[perm],
                     ((0, 0), (0, pad_h), (0, pad_h)))
    w_hh_t = jnp.transpose(w_hh_g, (2, 0, 1)).reshape(hp, 4 * hp)

    b = jnp.pad((b_ih + b_hh).reshape(4, h)[perm], ((0, 0), (0, pad_h)))
    b = b.reshape(1, 4 * hp)

    w_ffn_p = jnp.zeros((hp, 128), jnp.float32).at[:h, 0].set(w_ffn[0])
    b_ffn_p = jnp.zeros((1, 128), jnp.float32).at[0, 0].set(b_ffn[0])

    return {
        "emb": emb_p,
        "w_ih_t": w_ih_t.astype(jnp.bfloat16),
        "w_hh_t": w_hh_t.astype(jnp.bfloat16),
        "b_gates": b.astype(jnp.float32),
        "w_ffn_p": w_ffn_p,
        "b_ffn_p": b_ffn_p,
    }


@jax.jit
def example_model_forward(x_ids, params):
    """Mirrors ExampleModel.forward: embed -> LSTM -> ffn(h_n) -> (1, B, 1)."""
    b = x_ids.shape[0]
    out_pad = fused_forward_pallas(
        x_ids.astype(jnp.int32), params["emb"], params["w_ih_t"],
        params["w_hh_t"], params["b_gates"], params["w_ffn_p"],
        params["b_ffn_p"])                                       # (Bp, 128)
    return out_pad[:b, :1][None, :, :]                           # (1, B, 1)


def _reference_forward(x_ids, embedding_matrix, w_ih, w_hh, b_ih, b_hh,
                       w_ffn, b_ffn):
    """Pure-JAX f32 reference with PyTorch LSTM semantics."""
    x_emb = jnp.take(embedding_matrix, x_ids, axis=0)            # (B, T, E)
    batch = x_emb.shape[0]
    h_dim = w_hh.shape[1]
    wih_t, whh_t = w_ih.T, w_hh.T
    bias = (b_ih + b_hh)[None, :]
    h = jnp.zeros((batch, h_dim), jnp.float32)
    c = jnp.zeros((batch, h_dim), jnp.float32)

    def step(carry, x_t):
        h, c = carry
        gates = x_t @ wih_t + h @ whh_t + bias
        i = jax.nn.sigmoid(gates[:, 0 * h_dim:1 * h_dim])
        f = jax.nn.sigmoid(gates[:, 1 * h_dim:2 * h_dim])
        g = jnp.tanh(gates[:, 2 * h_dim:3 * h_dim])
        o = jax.nn.sigmoid(gates[:, 3 * h_dim:4 * h_dim])
        c = f * c + i * g
        h = o * jnp.tanh(c)
        return (h, c), None

    (h, c), _ = lax.scan(step, (h, c), jnp.transpose(x_emb, (1, 0, 2)))
    out = h @ w_ffn.T + b_ffn[None, :]
    return out[None, :, :]


if __name__ == "__main__":
    V, E, H = 50, 100, 100     # vocab, embedding dim, hidden dim (LSTM(100,100))
    B, T = 2, 8                # small batch / sequence

    key = jax.random.PRNGKey(0)
    k_emb, k_ids, k_wih, k_whh, k_bih, k_bhh, k_wf, k_bf = jax.random.split(key, 8)

    embedding_matrix = jax.random.normal(k_emb, (V, E), jnp.float32) * 0.5
    x_ids = jax.random.randint(k_ids, (B, T), 0, V, jnp.int32)

    # PyTorch parameter shapes: weight_ih_l0 (4H, E), weight_hh_l0 (4H, H),
    # bias_ih_l0 (4H,), bias_hh_l0 (4H,), ffn.weight (1, H), ffn.bias (1,)
    scale = 0.1
    w_ih = jax.random.normal(k_wih, (4 * H, E), jnp.float32) * scale
    w_hh = jax.random.normal(k_whh, (4 * H, H), jnp.float32) * scale
    b_ih = jax.random.normal(k_bih, (4 * H,), jnp.float32) * scale
    b_hh = jax.random.normal(k_bhh, (4 * H,), jnp.float32) * scale
    w_ffn = jax.random.normal(k_wf, (1, H), jnp.float32) * scale
    b_ffn = jax.random.normal(k_bf, (1,), jnp.float32) * scale

    params = prepare_params(embedding_matrix, w_ih, w_hh, b_ih, b_hh,
                            w_ffn, b_ffn)

    out = example_model_forward(x_ids, params)
    out = jax.block_until_ready(out)

    ref = jax.block_until_ready(
        _reference_forward(x_ids, embedding_matrix, w_ih, w_hh, b_ih, b_hh,
                           w_ffn, b_ffn))

    assert out.shape == (1, B, 1), out.shape
    # Tolerance covers the bf16 quantization of MXU operands (emb rows, w_ih,
    # w_hh); gate math and the FFN epilogue are f32.
    assert jnp.allclose(out, ref, atol=3e-2, rtol=3e-2), (out, ref)

    print("KERNEL_OK")
</pallas_src>

<mosaic_0001>
module attributes {stable_mosaic.version = 11 : i64} {
  func.func @_fused_lstm_kernel(%arg0: memref<2x8xi32, #tpu.memory_space<smem>>, %arg1: memref<50x128xf32, #tpu.memory_space<vmem>>, %arg2: memref<128x512xbf16, #tpu.memory_space<vmem>>, %arg3: memref<128x512xbf16, #tpu.memory_space<vmem>>, %arg4: memref<1x512xf32, #tpu.memory_space<vmem>>, %arg5: memref<128x128xf32, #tpu.memory_space<vmem>>, %arg6: memref<1x128xf32, #tpu.memory_space<vmem>>, %arg7: memref<8x128xf32, #tpu.memory_space<vmem>>, %arg8: memref<64x128xf32, #tpu.memory_space<vmem>>, %arg9: memref<64x512xf32, #tpu.memory_space<vmem>>) attributes {dimension_semantics = [], scalar_prefetch = 1 : i64, scratch_operands = 2 : i64, tpu.core_type = #tpu.core_type<tc>} {
    %cst = arith.constant 0.000000e+00 : f32
    %0 = vector.broadcast %cst : f32 to vector<64x128xf32>
    %c0 = arith.constant 0 : index
    %c0_0 = arith.constant 0 : index
    %1 = vector.load %arg8[%c0, %c0_0] : memref<64x128xf32, #tpu.memory_space<vmem>>, vector<64x128xf32>
    tpu.vector_store %arg8[%c0, %c0_0], %0 {strides = array<i32>} : memref<64x128xf32, #tpu.memory_space<vmem>>, vector<64x128xf32>,
    %c0_1 = arith.constant 0 : index
    %c0_2 = arith.constant 0 : index
    %2 = memref.load %arg0[%c0_1, %c0_2] : memref<2x8xi32, #tpu.memory_space<smem>>
    %3 = arith.index_cast %2 : i32 to index
    %c0_3 = arith.constant 0 : index
    %4 = vector.load %arg1[%3, %c0_3] : memref<50x128xf32, #tpu.memory_space<vmem>>, vector<1x128xf32>
    %c0_4 = arith.constant 0 : index
    %c0_5 = arith.constant 0 : index
    %5 = vector.load %arg8[%c0_4, %c0_5] : memref<64x128xf32, #tpu.memory_space<vmem>>, vector<1x128xf32>
    tpu.vector_store %arg8[%c0_4, %c0_5], %4 {strides = array<i32>} : memref<64x128xf32, #tpu.memory_space<vmem>>, vector<1x128xf32>,
    %c1 = arith.constant 1 : index
    %c0_6 = arith.constant 0 : index
    %6 = memref.load %arg0[%c1, %c0_6] : memref<2x8xi32, #tpu.memory_space<smem>>
    %7 = arith.index_cast %6 : i32 to index
    %c0_7 = arith.constant 0 : index
    %8 = vector.load %arg1[%7, %c0_7] : memref<50x128xf32, #tpu.memory_space<vmem>>, vector<1x128xf32>
    %c1_8 = arith.constant 1 : index
    %c0_9 = arith.constant 0 : index
    %9 = vector.load %arg8[%c1_8, %c0_9] : memref<64x128xf32, #tpu.memory_space<vmem>>, vector<1x128xf32>
    tpu.vector_store %arg8[%c1_8, %c0_9], %8 {strides = array<i32>} : memref<64x128xf32, #tpu.memory_space<vmem>>, vector<1x128xf32>,
    %c0_10 = arith.constant 0 : index
    %c1_11 = arith.constant 1 : index
    %10 = memref.load %arg0[%c0_10, %c1_11] : memref<2x8xi32, #tpu.memory_space<smem>>
    %11 = arith.index_cast %10 : i32 to index
    %c0_12 = arith.constant 0 : index
    %12 = vector.load %arg1[%11, %c0_12] : memref<50x128xf32, #tpu.memory_space<vmem>>, vector<1x128xf32>
    %c8 = arith.constant 8 : index
    %c0_13 = arith.constant 0 : index
    %13 = vector.load %arg8[%c8, %c0_13] : memref<64x128xf32, #tpu.memory_space<vmem>>, vector<1x128xf32>
    tpu.vector_store %arg8[%c8, %c0_13], %12 {strides = array<i32>} : memref<64x128xf32, #tpu.memory_space<vmem>>, vector<1x128xf32>,
    %c1_14 = arith.constant 1 : index
    %c1_15 = arith.constant 1 : index
    %14 = memref.load %arg0[%c1_14, %c1_15] : memref<2x8xi32, #tpu.memory_space<smem>>
    %15 = arith.index_cast %14 : i32 to index
    %c0_16 = arith.constant 0 : index
    %16 = vector.load %arg1[%15, %c0_16] : memref<50x128xf32, #tpu.memory_space<vmem>>, vector<1x128xf32>
    %c9 = arith.constant 9 : index
    %c0_17 = arith.constant 0 : index
    %17 = vector.load %arg8[%c9, %c0_17] : memref<64x128xf32, #tpu.memory_space<vmem>>, vector<1x128xf32>
    tpu.vector_store %arg8[%c9, %c0_17], %16 {strides = array<i32>} : memref<64x128xf32, #tpu.memory_space<vmem>>, vector<1x128xf32>,
    %c0_18 = arith.constant 0 : index
    %c2 = arith.constant 2 : index
    %18 = memref.load %arg0[%c0_18, %c2] : memref<2x8xi32, #tpu.memory_space<smem>>
    %19 = arith.index_cast %18 : i32 to index
    %c0_19 = arith.constant 0 : index
    %20 = vector.load %arg1[%19, %c0_19] : memref<50x128xf32, #tpu.memory_space<vmem>>, vector<1x128xf32>
    %c16 = arith.constant 16 : index
    %c0_20 = arith.constant 0 : index
    %21 = vector.load %arg8[%c16, %c0_20] : memref<64x128xf32, #tpu.memory_space<vmem>>, vector<1x128xf32>
    tpu.vector_store %arg8[%c16, %c0_20], %20 {strides = array<i32>} : memref<64x128xf32, #tpu.memory_space<vmem>>, vector<1x128xf32>,
    %c1_21 = arith.constant 1 : index
    %c2_22 = arith.constant 2 : index
    %22 = memref.load %arg0[%c1_21, %c2_22] : memref<2x8xi32, #tpu.memory_space<smem>>
    %23 = arith.index_cast %22 : i32 to index
    %c0_23 = arith.constant 0 : index
    %24 = vector.load %arg1[%23, %c0_23] : memref<50x128xf32, #tpu.memory_space<vmem>>, vector<1x128xf32>
    %c17 = arith.constant 17 : index
    %c0_24 = arith.constant 0 : index
    %25 = vector.load %arg8[%c17, %c0_24] : memref<64x128xf32, #tpu.memory_space<vmem>>, vector<1x128xf32>
    tpu.vector_store %arg8[%c17, %c0_24], %24 {strides = array<i32>} : memref<64x128xf32, #tpu.memory_space<vmem>>, vector<1x128xf32>,
    %c0_25 = arith.constant 0 : index
    %c3 = arith.constant 3 : index
    %26 = memref.load %arg0[%c0_25, %c3] : memref<2x8xi32, #tpu.memory_space<smem>>
    %27 = arith.index_cast %26 : i32 to index
    %c0_26 = arith.constant 0 : index
    %28 = vector.load %arg1[%27, %c0_26] : memref<50x128xf32, #tpu.memory_space<vmem>>, vector<1x128xf32>
    %c24 = arith.constant 24 : index
    %c0_27 = arith.constant 0 : index
    %29 = vector.load %arg8[%c24, %c0_27] : memref<64x128xf32, #tpu.memory_space<vmem>>, vector<1x128xf32>
    tpu.vector_store %arg8[%c24, %c0_27], %28 {strides = array<i32>} : memref<64x128xf32, #tpu.memory_space<vmem>>, vector<1x128xf32>,
    %c1_28 = arith.constant 1 : index
    %c3_29 = arith.constant 3 : index
    %30 = memref.load %arg0[%c1_28, %c3_29] : memref<2x8xi32, #tpu.memory_space<smem>>
    %31 = arith.index_cast %30 : i32 to index
    %c0_30 = arith.constant 0 : index
    %32 = vector.load %arg1[%31, %c0_30] : memref<50x128xf32, #tpu.memory_space<vmem>>, vector<1x128xf32>
    %c25 = arith.constant 25 : index
    %c0_31 = arith.constant 0 : index
    %33 = vector.load %arg8[%c25, %c0_31] : memref<64x128xf32, #tpu.memory_space<vmem>>, vector<1x128xf32>
    tpu.vector_store %arg8[%c25, %c0_31], %32 {strides = array<i32>} : memref<64x128xf32, #tpu.memory_space<vmem>>, vector<1x128xf32>,
    %c0_32 = arith.constant 0 : index
    %c4 = arith.constant 4 : index
    %34 = memref.load %arg0[%c0_32, %c4] : memref<2x8xi32, #tpu.memory_space<smem>>
    %35 = arith.index_cast %34 : i32 to index
    %c0_33 = arith.constant 0 : index
    %36 = vector.load %arg1[%35, %c0_33] : memref<50x128xf32, #tpu.memory_space<vmem>>, vector<1x128xf32>
    %c32 = arith.constant 32 : index
    %c0_34 = arith.constant 0 : index
    %37 = vector.load %arg8[%c32, %c0_34] : memref<64x128xf32, #tpu.memory_space<vmem>>, vector<1x128xf32>
    tpu.vector_store %arg8[%c32, %c0_34], %36 {strides = array<i32>} : memref<64x128xf32, #tpu.memory_space<vmem>>, vector<1x128xf32>,
    %c1_35 = arith.constant 1 : index
    %c4_36 = arith.constant 4 : index
    %38 = memref.load %arg0[%c1_35, %c4_36] : memref<2x8xi32, #tpu.memory_space<smem>>
    %39 = arith.index_cast %38 : i32 to index
    %c0_37 = arith.constant 0 : index
    %40 = vector.load %arg1[%39, %c0_37] : memref<50x128xf32, #tpu.memory_space<vmem>>, vector<1x128xf32>
    %c33 = arith.constant 33 : index
    %c0_38 = arith.constant 0 : index
    %41 = vector.load %arg8[%c33, %c0_38] : memref<64x128xf32, #tpu.memory_space<vmem>>, vector<1x128xf32>
    tpu.vector_store %arg8[%c33, %c0_38], %40 {strides = array<i32>} : memref<64x128xf32, #tpu.memory_space<vmem>>, vector<1x128xf32>,
    %c0_39 = arith.constant 0 : index
    %c5 = arith.constant 5 : index
    %42 = memref.load %arg0[%c0_39, %c5] : memref<2x8xi32, #tpu.memory_space<smem>>
    %43 = arith.index_cast %42 : i32 to index
    %c0_40 = arith.constant 0 : index
    %44 = vector.load %arg1[%43, %c0_40] : memref<50x128xf32, #tpu.memory_space<vmem>>, vector<1x128xf32>
    %c40 = arith.constant 40 : index
    %c0_41 = arith.constant 0 : index
    %45 = vector.load %arg8[%c40, %c0_41] : memref<64x128xf32, #tpu.memory_space<vmem>>, vector<1x128xf32>
    tpu.vector_store %arg8[%c40, %c0_41], %44 {strides = array<i32>} : memref<64x128xf32, #tpu.memory_space<vmem>>, vector<1x128xf32>,
    %c1_42 = arith.constant 1 : index
    %c5_43 = arith.constant 5 : index
    %46 = memref.load %arg0[%c1_42, %c5_43] : memref<2x8xi32, #tpu.memory_space<smem>>
    %47 = arith.index_cast %46 : i32 to index
    %c0_44 = arith.constant 0 : index
    %48 = vector.load %arg1[%47, %c0_44] : memref<50x128xf32, #tpu.memory_space<vmem>>, vector<1x128xf32>
    %c41 = arith.constant 41 : index
    %c0_45 = arith.constant 0 : index
    %49 = vector.load %arg8[%c41, %c0_45] : memref<64x128xf32, #tpu.memory_space<vmem>>, vector<1x128xf32>
    tpu.vector_store %arg8[%c41, %c0_45], %48 {strides = array<i32>} : memref<64x128xf32, #tpu.memory_space<vmem>>, vector<1x128xf32>,
    %c0_46 = arith.constant 0 : index
    %c6 = arith.constant 6 : index
    %50 = memref.load %arg0[%c0_46, %c6] : memref<2x8xi32, #tpu.memory_space<smem>>
    %51 = arith.index_cast %50 : i32 to index
    %c0_47 = arith.constant 0 : index
    %52 = vector.load %arg1[%51, %c0_47] : memref<50x128xf32, #tpu.memory_space<vmem>>, vector<1x128xf32>
    %c48 = arith.constant 48 : index
    %c0_48 = arith.constant 0 : index
    %53 = vector.load %arg8[%c48, %c0_48] : memref<64x128xf32, #tpu.memory_space<vmem>>, vector<1x128xf32>
    tpu.vector_store %arg8[%c48, %c0_48], %52 {strides = array<i32>} : memref<64x128xf32, #tpu.memory_space<vmem>>, vector<1x128xf32>,
    %c1_49 = arith.constant 1 : index
    %c6_50 = arith.constant 6 : index
    %54 = memref.load %arg0[%c1_49, %c6_50] : memref<2x8xi32, #tpu.memory_space<smem>>
    %55 = arith.index_cast %54 : i32 to index
    %c0_51 = arith.constant 0 : index
    %56 = vector.load %arg1[%55, %c0_51] : memref<50x128xf32, #tpu.memory_space<vmem>>, vector<1x128xf32>
    %c49 = arith.constant 49 : index
    %c0_52 = arith.constant 0 : index
    %57 = vector.load %arg8[%c49, %c0_52] : memref<64x128xf32, #tpu.memory_space<vmem>>, vector<1x128xf32>
    tpu.vector_store %arg8[%c49, %c0_52], %56 {strides = array<i32>} : memref<64x128xf32, #tpu.memory_space<vmem>>, vector<1x128xf32>,
    %c0_53 = arith.constant 0 : index
    %c7 = arith.constant 7 : index
    %58 = memref.load %arg0[%c0_53, %c7] : memref<2x8xi32, #tpu.memory_space<smem>>
    %59 = arith.index_cast %58 : i32 to index
    %c0_54 = arith.constant 0 : index
    %60 = vector.load %arg1[%59, %c0_54] : memref<50x128xf32, #tpu.memory_space<vmem>>, vector<1x128xf32>
    %c56 = arith.constant 56 : index
    %c0_55 = arith.constant 0 : index
    %61 = vector.load %arg8[%c56, %c0_55] : memref<64x128xf32, #tpu.memory_space<vmem>>, vector<1x128xf32>
    tpu.vector_store %arg8[%c56, %c0_55], %60 {strides = array<i32>} : memref<64x128xf32, #tpu.memory_space<vmem>>, vector<1x128xf32>,
    %c1_56 = arith.constant 1 : index
    %c7_57 = arith.constant 7 : index
    %62 = memref.load %arg0[%c1_56, %c7_57] : memref<2x8xi32, #tpu.memory_space<smem>>
    %63 = arith.index_cast %62 : i32 to index
    %c0_58 = arith.constant 0 : index
    %64 = vector.load %arg1[%63, %c0_58] : memref<50x128xf32, #tpu.memory_space<vmem>>, vector<1x128xf32>
    %c57 = arith.constant 57 : index
    %c0_59 = arith.constant 0 : index
    %65 = vector.load %arg8[%c57, %c0_59] : memref<64x128xf32, #tpu.memory_space<vmem>>, vector<1x128xf32>
    tpu.vector_store %arg8[%c57, %c0_59], %64 {strides = array<i32>} : memref<64x128xf32, #tpu.memory_space<vmem>>, vector<1x128xf32>,
    %c0_60 = arith.constant 0 : index
    %c0_61 = arith.constant 0 : index
    %66 = vector.load %arg8[%c0_60, %c0_61] : memref<64x128xf32, #tpu.memory_space<vmem>>, vector<64x128xf32>
    %67 = arith.truncf %66 : vector<64x128xf32> to vector<64x128xbf16>
    %c0_62 = arith.constant 0 : index
    %c0_63 = arith.constant 0 : index
    %68 = vector.load %arg2[%c0_62, %c0_63] : memref<128x512xbf16, #tpu.memory_space<vmem>>, vector<128x512xbf16>
    %cst_64 = arith.constant dense<0.000000e+00> : vector<64x512xf32>
    %69 = tpu.matmul %67, %68, %cst_64 {dimension_numbers = #tpu.dot_dimension_numbers<[1], [0], [0], [1], [0, 0, 1, 1], [], []>} : vector<64x128xbf16>, vector<128x512xbf16>, vector<64x512xf32> -> vector<64x512xf32>
    %c0_65 = arith.constant 0 : index
    %c0_66 = arith.constant 0 : index
    %70 = vector.load %arg4[%c0_65, %c0_66] : memref<1x512xf32, #tpu.memory_space<vmem>>, vector<1x512xf32>
    %71 = vector.broadcast %70 : vector<1x512xf32> to vector<64x512xf32>
    %72 = arith.addf %69, %71 : vector<64x512xf32>
    %c0_67 = arith.constant 0 : index
    %c0_68 = arith.constant 0 : index
    %73 = vector.load %arg9[%c0_67, %c0_68] : memref<64x512xf32, #tpu.memory_space<vmem>>, vector<64x512xf32>
    tpu.vector_store %arg9[%c0_67, %c0_68], %72 {strides = array<i32>} : memref<64x512xf32, #tpu.memory_space<vmem>>, vector<64x512xf32>,
    %cst_69 = arith.constant 0.000000e+00 : f32
    %74 = vector.broadcast %cst_69 : f32 to vector<8x128xf32>
    %cst_70 = arith.constant 0.000000e+00 : f32
    %75 = vector.broadcast %cst_70 : f32 to vector<8x128xf32>
    %c0_i32 = arith.constant 0 : i32
    %c8_i32 = arith.constant 8 : i32
    %76 = arith.muli %c0_i32, %c8_i32 : i32
    %77 = tpu.assume_multiple %76, 8 : i32
    %78 = arith.index_cast %77 : i32 to index
    %c0_71 = arith.constant 0 : index
    %79 = vector.load %arg9[%78, %c0_71] : memref<64x512xf32, #tpu.memory_space<vmem>>, vector<8x512xf32>
    %80 = arith.truncf %74 : vector<8x128xf32> to vector<8x128xbf16>
    %c0_72 = arith.constant 0 : index
    %c0_73 = arith.constant 0 : index
    %81 = vector.load %arg3[%c0_72, %c0_73] : memref<128x512xbf16, #tpu.memory_space<vmem>>, vector<128x512xbf16>
    %cst_74 = arith.constant dense<0.000000e+00> : vector<8x512xf32>
    %82 = tpu.matmul %80, %81, %cst_74 {dimension_numbers = #tpu.dot_dimension_numbers<[1], [0], [0], [1], [0, 0, 1, 1], [], []>} : vector<8x128xbf16>, vector<128x512xbf16>, vector<8x512xf32> -> vector<8x512xf32>
    %83 = arith.addf %79, %82 : vector<8x512xf32>
    %84 = vector.extract_strided_slice %83 {offsets = [0, 0], sizes = [8, 384], strides = [1, 1]} : vector<8x512xf32> to vector<8x384xf32>
    %85 = arith.negf %84 : vector<8x384xf32>
    %86 = math.exp %85 : vector<8x384xf32>
    %cst_75 = arith.constant 1.000000e+00 : f32
    %87 = vector.broadcast %cst_75 : f32 to vector<8x384xf32>
    %88 = arith.addf %87, %86 : vector<8x384xf32>
    %89 = arith.divf %87, %88 : vector<8x384xf32>
    %90 = vector.extract_strided_slice %89 {offsets = [0, 0], sizes = [8, 128], strides = [1, 1]} : vector<8x384xf32> to vector<8x128xf32>
    %91 = vector.extract_strided_slice %89 {offsets = [0, 128], sizes = [8, 128], strides = [1, 1]} : vector<8x384xf32> to vector<8x128xf32>
    %92 = vector.extract_strided_slice %89 {offsets = [0, 256], sizes = [8, 128], strides = [1, 1]} : vector<8x384xf32> to vector<8x128xf32>
    %93 = vector.extract_strided_slice %83 {offsets = [0, 384], sizes = [8, 128], strides = [1, 1]} : vector<8x512xf32> to vector<8x128xf32>
    %94 = math.tanh %93 : vector<8x128xf32>
    %95 = arith.mulf %91, %75 : vector<8x128xf32>
    %96 = arith.mulf %90, %94 : vector<8x128xf32>
    %97 = arith.addf %95, %96 : vector<8x128xf32>
    %98 = math.tanh %97 : vector<8x128xf32>
    %99 = arith.mulf %92, %98 : vector<8x128xf32>
    %c1_i32 = arith.constant 1 : i32
    %c8_i32_76 = arith.constant 8 : i32
    %100 = arith.muli %c1_i32, %c8_i32_76 : i32
    %101 = tpu.assume_multiple %100, 8 : i32
    %102 = arith.index_cast %101 : i32 to index
    %c0_77 = arith.constant 0 : index
    %103 = vector.load %arg9[%102, %c0_77] : memref<64x512xf32, #tpu.memory_space<vmem>>, vector<8x512xf32>
    %104 = arith.truncf %99 : vector<8x128xf32> to vector<8x128xbf16>
    %c0_78 = arith.constant 0 : index
    %c0_79 = arith.constant 0 : index
    %105 = vector.load %arg3[%c0_78, %c0_79] : memref<128x512xbf16, #tpu.memory_space<vmem>>, vector<128x512xbf16>
    %cst_80 = arith.constant dense<0.000000e+00> : vector<8x512xf32>
    %106 = tpu.matmul %104, %105, %cst_80 {dimension_numbers = #tpu.dot_dimension_numbers<[1], [0], [0], [1], [0, 0, 1, 1], [], []>} : vector<8x128xbf16>, vector<128x512xbf16>, vector<8x512xf32> -> vector<8x512xf32>
    %107 = arith.addf %103, %106 : vector<8x512xf32>
    %108 = vector.extract_strided_slice %107 {offsets = [0, 0], sizes = [8, 384], strides = [1, 1]} : vector<8x512xf32> to vector<8x384xf32>
    %109 = arith.negf %108 : vector<8x384xf32>
    %110 = math.exp %109 : vector<8x384xf32>
    %cst_81 = arith.constant 1.000000e+00 : f32
    %111 = vector.broadcast %cst_81 : f32 to vector<8x384xf32>
    %112 = arith.addf %111, %110 : vector<8x384xf32>
    %113 = arith.divf %111, %112 : vector<8x384xf32>
    %114 = vector.extract_strided_slice %113 {offsets = [0, 0], sizes = [8, 128], strides = [1, 1]} : vector<8x384xf32> to vector<8x128xf32>
    %115 = vector.extract_strided_slice %113 {offsets = [0, 128], sizes = [8, 128], strides = [1, 1]} : vector<8x384xf32> to vector<8x128xf32>
    %116 = vector.extract_strided_slice %113 {offsets = [0, 256], sizes = [8, 128], strides = [1, 1]} : vector<8x384xf32> to vector<8x128xf32>
    %117 = vector.extract_strided_slice %107 {offsets = [0, 384], sizes = [8, 128], strides = [1, 1]} : vector<8x512xf32> to vector<8x128xf32>
    %118 = math.tanh %117 : vector<8x128xf32>
    %119 = arith.mulf %115, %97 : vector<8x128xf32>
    %120 = arith.mulf %114, %118 : vector<8x128xf32>
    %121 = arith.addf %119, %120 : vector<8x128xf32>
    %122 = math.tanh %121 : vector<8x128xf32>
    %123 = arith.mulf %116, %122 : vector<8x128xf32>
    %c2_i32 = arith.constant 2 : i32
    %c8_i32_82 = arith.constant 8 : i32
    %124 = arith.muli %c2_i32, %c8_i32_82 : i32
    %125 = tpu.assume_multiple %124, 8 : i32
    %126 = arith.index_cast %125 : i32 to index
    %c0_83 = arith.constant 0 : index
    %127 = vector.load %arg9[%126, %c0_83] : memref<64x512xf32, #tpu.memory_space<vmem>>, vector<8x512xf32>
    %128 = arith.truncf %123 : vector<8x128xf32> to vector<8x128xbf16>
    %c0_84 = arith.constant 0 : index
    %c0_85 = arith.constant 0 : index
    %129 = vector.load %arg3[%c0_84, %c0_85] : memref<128x512xbf16, #tpu.memory_space<vmem>>, vector<128x512xbf16>
    %cst_86 = arith.constant dense<0.000000e+00> : vector<8x512xf32>
    %130 = tpu.matmul %128, %129, %cst_86 {dimension_numbers = #tpu.dot_dimension_numbers<[1], [0], [0], [1], [0, 0, 1, 1], [], []>} : vector<8x128xbf16>, vector<128x512xbf16>, vector<8x512xf32> -> vector<8x512xf32>
    %131 = arith.addf %127, %130 : vector<8x512xf32>
    %132 = vector.extract_strided_slice %131 {offsets = [0, 0], sizes = [8, 384], strides = [1, 1]} : vector<8x512xf32> to vector<8x384xf32>
    %133 = arith.negf %132 : vector<8x384xf32>
    %134 = math.exp %133 : vector<8x384xf32>
    %cst_87 = arith.constant 1.000000e+00 : f32
    %135 = vector.broadcast %cst_87 : f32 to vector<8x384xf32>
    %136 = arith.addf %135, %134 : vector<8x384xf32>
    %137 = arith.divf %135, %136 : vector<8x384xf32>
    %138 = vector.extract_strided_slice %137 {offsets = [0, 0], sizes = [8, 128], strides = [1, 1]} : vector<8x384xf32> to vector<8x128xf32>
    %139 = vector.extract_strided_slice %137 {offsets = [0, 128], sizes = [8, 128], strides = [1, 1]} : vector<8x384xf32> to vector<8x128xf32>
    %140 = vector.extract_strided_slice %137 {offsets = [0, 256], sizes = [8, 128], strides = [1, 1]} : vector<8x384xf32> to vector<8x128xf32>
    %141 = vector.extract_strided_slice %131 {offsets = [0, 384], sizes = [8, 128], strides = [1, 1]} : vector<8x512xf32> to vector<8x128xf32>
    %142 = math.tanh %141 : vector<8x128xf32>
    %143 = arith.mulf %139, %121 : vector<8x128xf32>
    %144 = arith.mulf %138, %142 : vector<8x128xf32>
    %145 = arith.addf %143, %144 : vector<8x128xf32>
    %146 = math.tanh %145 : vector<8x128xf32>
    %147 = arith.mulf %140, %146 : vector<8x128xf32>
    %c3_i32 = arith.constant 3 : i32
    %c8_i32_88 = arith.constant 8 : i32
    %148 = arith.muli %c3_i32, %c8_i32_88 : i32
    %149 = tpu.assume_multiple %148, 8 : i32
    %150 = arith.index_cast %149 : i32 to index
    %c0_89 = arith.constant 0 : index
    %151 = vector.load %arg9[%150, %c0_89] : memref<64x512xf32, #tpu.memory_space<vmem>>, vector<8x512xf32>
    %152 = arith.truncf %147 : vector<8x128xf32> to vector<8x128xbf16>
    %c0_90 = arith.constant 0 : index
    %c0_91 = arith.constant 0 : index
    %153 = vector.load %arg3[%c0_90, %c0_91] : memref<128x512xbf16, #tpu.memory_space<vmem>>, vector<128x512xbf16>
    %cst_92 = arith.constant dense<0.000000e+00> : vector<8x512xf32>
    %154 = tpu.matmul %152, %153, %cst_92 {dimension_numbers = #tpu.dot_dimension_numbers<[1], [0], [0], [1], [0, 0, 1, 1], [], []>} : vector<8x128xbf16>, vector<128x512xbf16>, vector<8x512xf32> -> vector<8x512xf32>
    %155 = arith.addf %151, %154 : vector<8x512xf32>
    %156 = vector.extract_strided_slice %155 {offsets = [0, 0], sizes = [8, 384], strides = [1, 1]} : vector<8x512xf32> to vector<8x384xf32>
    %157 = arith.negf %156 : vector<8x384xf32>
    %158 = math.exp %157 : vector<8x384xf32>
    %cst_93 = arith.constant 1.000000e+00 : f32
    %159 = vector.broadcast %cst_93 : f32 to vector<8x384xf32>
    %160 = arith.addf %159, %158 : vector<8x384xf32>
    %161 = arith.divf %159, %160 : vector<8x384xf32>
    %162 = vector.extract_strided_slice %161 {offsets = [0, 0], sizes = [8, 128], strides = [1, 1]} : vector<8x384xf32> to vector<8x128xf32>
    %163 = vector.extract_strided_slice %161 {offsets = [0, 128], sizes = [8, 128], strides = [1, 1]} : vector<8x384xf32> to vector<8x128xf32>
    %164 = vector.extract_strided_slice %161 {offsets = [0, 256], sizes = [8, 128], strides = [1, 1]} : vector<8x384xf32> to vector<8x128xf32>
    %165 = vector.extract_strided_slice %155 {offsets = [0, 384], sizes = [8, 128], strides = [1, 1]} : vector<8x512xf32> to vector<8x128xf32>
    %166 = math.tanh %165 : vector<8x128xf32>
    %167 = arith.mulf %163, %145 : vector<8x128xf32>
    %168 = arith.mulf %162, %166 : vector<8x128xf32>
    %169 = arith.addf %167, %168 : vector<8x128xf32>
    %170 = math.tanh %169 : vector<8x128xf32>
    %171 = arith.mulf %164, %170 : vector<8x128xf32>
    %c4_i32 = arith.constant 4 : i32
    %c8_i32_94 = arith.constant 8 : i32
    %172 = arith.muli %c4_i32, %c8_i32_94 : i32
    %173 = tpu.assume_multiple %172, 8 : i32
    %174 = arith.index_cast %173 : i32 to index
    %c0_95 = arith.constant 0 : index
    %175 = vector.load %arg9[%174, %c0_95] : memref<64x512xf32, #tpu.memory_space<vmem>>, vector<8x512xf32>
    %176 = arith.truncf %171 : vector<8x128xf32> to vector<8x128xbf16>
    %c0_96 = arith.constant 0 : index
    %c0_97 = arith.constant 0 : index
    %177 = vector.load %arg3[%c0_96, %c0_97] : memref<128x512xbf16, #tpu.memory_space<vmem>>, vector<128x512xbf16>
    %cst_98 = arith.constant dense<0.000000e+00> : vector<8x512xf32>
    %178 = tpu.matmul %176, %177, %cst_98 {dimension_numbers = #tpu.dot_dimension_numbers<[1], [0], [0], [1], [0, 0, 1, 1], [], []>} : vector<8x128xbf16>, vector<128x512xbf16>, vector<8x512xf32> -> vector<8x512xf32>
    %179 = arith.addf %175, %178 : vector<8x512xf32>
    %180 = vector.extract_strided_slice %179 {offsets = [0, 0], sizes = [8, 384], strides = [1, 1]} : vector<8x512xf32> to vector<8x384xf32>
    %181 = arith.negf %180 : vector<8x384xf32>
    %182 = math.exp %181 : vector<8x384xf32>
    %cst_99 = arith.constant 1.000000e+00 : f32
    %183 = vector.broadcast %cst_99 : f32 to vector<8x384xf32>
    %184 = arith.addf %183, %182 : vector<8x384xf32>
    %185 = arith.divf %183, %184 : vector<8x384xf32>
    %186 = vector.extract_strided_slice %185 {offsets = [0, 0], sizes = [8, 128], strides = [1, 1]} : vector<8x384xf32> to vector<8x128xf32>
    %187 = vector.extract_strided_slice %185 {offsets = [0, 128], sizes = [8, 128], strides = [1, 1]} : vector<8x384xf32> to vector<8x128xf32>
    %188 = vector.extract_strided_slice %185 {offsets = [0, 256], sizes = [8, 128], strides = [1, 1]} : vector<8x384xf32> to vector<8x128xf32>
    %189 = vector.extract_strided_slice %179 {offsets = [0, 384], sizes = [8, 128], strides = [1, 1]} : vector<8x512xf32> to vector<8x128xf32>
    %190 = math.tanh %189 : vector<8x128xf32>
    %191 = arith.mulf %187, %169 : vector<8x128xf32>
    %192 = arith.mulf %186, %190 : vector<8x128xf32>
    %193 = arith.addf %191, %192 : vector<8x128xf32>
    %194 = math.tanh %193 : vector<8x128xf32>
    %195 = arith.mulf %188, %194 : vector<8x128xf32>
    %c5_i32 = arith.constant 5 : i32
    %c8_i32_100 = arith.constant 8 : i32
    %196 = arith.muli %c5_i32, %c8_i32_100 : i32
    %197 = tpu.assume_multiple %196, 8 : i32
    %198 = arith.index_cast %197 : i32 to index
    %c0_101 = arith.constant 0 : index
    %199 = vector.load %arg9[%198, %c0_101] : memref<64x512xf32, #tpu.memory_space<vmem>>, vector<8x512xf32>
    %200 = arith.truncf %195 : vector<8x128xf32> to vector<8x128xbf16>
    %c0_102 = arith.constant 0 : index
    %c0_103 = arith.constant 0 : index
    %201 = vector.load %arg3[%c0_102, %c0_103] : memref<128x512xbf16, #tpu.memory_space<vmem>>, vector<128x512xbf16>
    %cst_104 = arith.constant dense<0.000000e+00> : vector<8x512xf32>
    %202 = tpu.matmul %200, %201, %cst_104 {dimension_numbers = #tpu.dot_dimension_numbers<[1], [0], [0], [1], [0, 0, 1, 1], [], []>} : vector<8x128xbf16>, vector<128x512xbf16>, vector<8x512xf32> -> vector<8x512xf32>
    %203 = arith.addf %199, %202 : vector<8x512xf32>
    %204 = vector.extract_strided_slice %203 {offsets = [0, 0], sizes = [8, 384], strides = [1, 1]} : vector<8x512xf32> to vector<8x384xf32>
    %205 = arith.negf %204 : vector<8x384xf32>
    %206 = math.exp %205 : vector<8x384xf32>
    %cst_105 = arith.constant 1.000000e+00 : f32
    %207 = vector.broadcast %cst_105 : f32 to vector<8x384xf32>
    %208 = arith.addf %207, %206 : vector<8x384xf32>
    %209 = arith.divf %207, %208 : vector<8x384xf32>
    %210 = vector.extract_strided_slice %209 {offsets = [0, 0], sizes = [8, 128], strides = [1, 1]} : vector<8x384xf32> to vector<8x128xf32>
    %211 = vector.extract_strided_slice %209 {offsets = [0, 128], sizes = [8, 128], strides = [1, 1]} : vector<8x384xf32> to vector<8x128xf32>
    %212 = vector.extract_strided_slice %209 {offsets = [0, 256], sizes = [8, 128], strides = [1, 1]} : vector<8x384xf32> to vector<8x128xf32>
    %213 = vector.extract_strided_slice %203 {offsets = [0, 384], sizes = [8, 128], strides = [1, 1]} : vector<8x512xf32> to vector<8x128xf32>
    %214 = math.tanh %213 : vector<8x128xf32>
    %215 = arith.mulf %211, %193 : vector<8x128xf32>
    %216 = arith.mulf %210, %214 : vector<8x128xf32>
    %217 = arith.addf %215, %216 : vector<8x128xf32>
    %218 = math.tanh %217 : vector<8x128xf32>
    %219 = arith.mulf %212, %218 : vector<8x128xf32>
    %c6_i32 = arith.constant 6 : i32
    %c8_i32_106 = arith.constant 8 : i32
    %220 = arith.muli %c6_i32, %c8_i32_106 : i32
    %221 = tpu.assume_multiple %220, 8 : i32
    %222 = arith.index_cast %221 : i32 to index
    %c0_107 = arith.constant 0 : index
    %223 = vector.load %arg9[%222, %c0_107] : memref<64x512xf32, #tpu.memory_space<vmem>>, vector<8x512xf32>
    %224 = arith.truncf %219 : vector<8x128xf32> to vector<8x128xbf16>
    %c0_108 = arith.constant 0 : index
    %c0_109 = arith.constant 0 : index
    %225 = vector.load %arg3[%c0_108, %c0_109] : memref<128x512xbf16, #tpu.memory_space<vmem>>, vector<128x512xbf16>
    %cst_110 = arith.constant dense<0.000000e+00> : vector<8x512xf32>
    %226 = tpu.matmul %224, %225, %cst_110 {dimension_numbers = #tpu.dot_dimension_numbers<[1], [0], [0], [1], [0, 0, 1, 1], [], []>} : vector<8x128xbf16>, vector<128x512xbf16>, vector<8x512xf32> -> vector<8x512xf32>
    %227 = arith.addf %223, %226 : vector<8x512xf32>
    %228 = vector.extract_strided_slice %227 {offsets = [0, 0], sizes = [8, 384], strides = [1, 1]} : vector<8x512xf32> to vector<8x384xf32>
    %229 = arith.negf %228 : vector<8x384xf32>
    %230 = math.exp %229 : vector<8x384xf32>
    %cst_111 = arith.constant 1.000000e+00 : f32
    %231 = vector.broadcast %cst_111 : f32 to vector<8x384xf32>
    %232 = arith.addf %231, %230 : vector<8x384xf32>
    %233 = arith.divf %231, %232 : vector<8x384xf32>
    %234 = vector.extract_strided_slice %233 {offsets = [0, 0], sizes = [8, 128], strides = [1, 1]} : vector<8x384xf32> to vector<8x128xf32>
    %235 = vector.extract_strided_slice %233 {offsets = [0, 128], sizes = [8, 128], strides = [1, 1]} : vector<8x384xf32> to vector<8x128xf32>
    %236 = vector.extract_strided_slice %233 {offsets = [0, 256], sizes = [8, 128], strides = [1, 1]} : vector<8x384xf32> to vector<8x128xf32>
    %237 = vector.extract_strided_slice %227 {offsets = [0, 384], sizes = [8, 128], strides = [1, 1]} : vector<8x512xf32> to vector<8x128xf32>
    %238 = math.tanh %237 : vector<8x128xf32>
    %239 = arith.mulf %235, %217 : vector<8x128xf32>
    %240 = arith.mulf %234, %238 : vector<8x128xf32>
    %241 = arith.addf %239, %240 : vector<8x128xf32>
    %242 = math.tanh %241 : vector<8x128xf32>
    %243 = arith.mulf %236, %242 : vector<8x128xf32>
    %c7_i32 = arith.constant 7 : i32
    %c8_i32_112 = arith.constant 8 : i32
    %244 = arith.muli %c7_i32, %c8_i32_112 : i32
    %245 = tpu.assume_multiple %244, 8 : i32
    %246 = arith.index_cast %245 : i32 to index
    %c0_113 = arith.constant 0 : index
    %247 = vector.load %arg9[%246, %c0_113] : memref<64x512xf32, #tpu.memory_space<vmem>>, vector<8x512xf32>
    %248 = arith.truncf %243 : vector<8x128xf32> to vector<8x128xbf16>
    %c0_114 = arith.constant 0 : index
    %c0_115 = arith.constant 0 : index
    %249 = vector.load %arg3[%c0_114, %c0_115] : memref<128x512xbf16, #tpu.memory_space<vmem>>, vector<128x512xbf16>
    %cst_116 = arith.constant dense<0.000000e+00> : vector<8x512xf32>
    %250 = tpu.matmul %248, %249, %cst_116 {dimension_numbers = #tpu.dot_dimension_numbers<[1], [0], [0], [1], [0, 0, 1, 1], [], []>} : vector<8x128xbf16>, vector<128x512xbf16>, vector<8x512xf32> -> vector<8x512xf32>
    %251 = arith.addf %247, %250 : vector<8x512xf32>
    %252 = vector.extract_strided_slice %251 {offsets = [0, 0], sizes = [8, 384], strides = [1, 1]} : vector<8x512xf32> to vector<8x384xf32>
    %253 = arith.negf %252 : vector<8x384xf32>
    %254 = math.exp %253 : vector<8x384xf32>
    %cst_117 = arith.constant 1.000000e+00 : f32
    %255 = vector.broadcast %cst_117 : f32 to vector<8x384xf32>
    %256 = arith.addf %255, %254 : vector<8x384xf32>
    %257 = arith.divf %255, %256 : vector<8x384xf32>
    %258 = vector.extract_strided_slice %257 {offsets = [0, 0], sizes = [8, 128], strides = [1, 1]} : vector<8x384xf32> to vector<8x128xf32>
    %259 = vector.extract_strided_slice %257 {offsets = [0, 128], sizes = [8, 128], strides = [1, 1]} : vector<8x384xf32> to vector<8x128xf32>
    %260 = vector.extract_strided_slice %257 {offsets = [0, 256], sizes = [8, 128], strides = [1, 1]} : vector<8x384xf32> to vector<8x128xf32>
    %261 = vector.extract_strided_slice %251 {offsets = [0, 384], sizes = [8, 128], strides = [1, 1]} : vector<8x512xf32> to vector<8x128xf32>
    %262 = math.tanh %261 : vector<8x128xf32>
    %263 = arith.mulf %259, %241 : vector<8x128xf32>
    %264 = arith.mulf %258, %262 : vector<8x128xf32>
    %265 = arith.addf %263, %264 : vector<8x128xf32>
    %266 = math.tanh %265 : vector<8x128xf32>
    %267 = arith.mulf %260, %266 : vector<8x128xf32>
    %c8_i32_118 = arith.constant 8 : i32
    %c0_119 = arith.constant 0 : index
    %c0_120 = arith.constant 0 : index
    %268 = vector.load %arg5[%c0_119, %c0_120] : memref<128x128xf32, #tpu.memory_space<vmem>>, vector<128x128xf32>
    %cst_121 = arith.constant dense<0.000000e+00> : vector<8x128xf32>
    %269 = tpu.matmul %267, %268, %cst_121 {dimension_numbers = #tpu.dot_dimension_numbers<[1], [0], [0], [1], [0, 0, 1, 1], [], []>} : vector<8x128xf32>, vector<128x128xf32>, vector<8x128xf32> -> vector<8x128xf32>
    %c0_122 = arith.constant 0 : index
    %c0_123 = arith.constant 0 : index
    %270 = vector.load %arg6[%c0_122, %c0_123] : memref<1x128xf32, #tpu.memory_space<vmem>>, vector<1x128xf32>
    %271 = vector.broadcast %270 : vector<1x128xf32> to vector<8x128xf32>
    %272 = arith.addf %269, %271 : vector<8x128xf32>
    %c0_124 = arith.constant 0 : index
    %c0_125 = arith.constant 0 : index
    %273 = vector.load %arg7[%c0_124, %c0_125] : memref<8x128xf32, #tpu.memory_space<vmem>>, vector<8x128xf32>
    tpu.vector_store %arg7[%c0_124, %c0_125], %272 {strides = array<i32>} : memref<8x128xf32, #tpu.memory_space<vmem>>, vector<8x128xf32>,
    return
  }
}

</mosaic_0001>

<bundles_post_ra>
// kernel: example_model_forward.1
= control target key start
LH: loop header
LB: loop body
LE: loop exit
PB: predicated region body
PF: predicated region fallthrough
CT: control target
= control target key end

     0   :  { %s3084_s0 = inlined_call_operand.hbm [shape: s32[2,8], index: 0, kind: input, shape index: {}]   ;;  %s3085_s1 = inlined_call_operand.hbm [shape: f32[50,128], index: 1, kind: input, shape index: {}]   ;;  %s3086_s2 = inlined_call_operand.hbm [shape: bf16[128,512], index: 2, kind: input, shape index: {}]   ;;  %s3087_s3 = inlined_call_operand.hbm [shape: bf16[128,512], index: 3, kind: input, shape index: {}]   ;;  %s3088_s4 = inlined_call_operand.vmem [shape: f32[1,512], index: 4, kind: input, shape index: {}]   ;;  %s3089_s5 = inlined_call_operand.hbm [shape: f32[128,128], index: 5, kind: input, shape index: {}]   ;;  %s3090_s6 = inlined_call_operand.vmem [shape: f32[1,128], index: 6, kind: input, shape index: {}]   ;;  %s3091_s7 = inlined_call_operand.vmem [shape: f32[8,128], index: 7, kind: output, shape index: {}]  }
   0x1   :  { %s2268_s26 = scalar_lea.hbm %s3084_s0, 32 }
   0x2   :  { %p2269_p0 = scmp.ne.s32.totalorder %s3084_s0, %s2268_s26  ;;  %p2272_p1 = scmp.lt.u32.totalorder %s2268_s26, %s3084_s0 }
   0x4   :  { %p2274_p2 = pnand %p2272_p1, %p2269_p0 }
   0x6   :  { %2277 = shalt.err (!%p2274_p2)  }
   0x7   :  { %s2374_s8 = smov [#allocation5]  }
   0x8   :  { %13 = dma.hbm_to_smem %s3084_s0, 32, %s2374_s8, [#allocation4] }
   0x9   :  { %2366 = dma.done.wait [#allocation4], 32 }
   0xa   :  { %2367 = vsyncadd [#allocation4], 4294967264 }
   0xb   :  { %15 = sfence }
   0xc   :  { %16 = vsyncpa [#allocation7], 0 }
   0xd   :  { %17 = vsyncpa [#allocation9], 0 }
   0xe   :  { %18 = vsyncpa [#allocation12], 0  ;;  %s2375_s11 = smov [#allocation8]   ;;  %s2278_s15 = scalar_lea.hbm %s3086_s2, 4096 }
   0xf   :  { %s36_s12 = sshll.u32 %s2375_s11, 4  ;;  %p2279_p3 = scmp.ne.s32.totalorder %s3086_s2, %s2278_s15  ;;  %s37_s12 = int_to_ptr.vmem [resolvable:$true] %s36_s12 }
  0x10   :  { %p2282_p4 = scmp.lt.u32.totalorder %s2278_s15, %s3086_s2 }
  0x12   :  { %p2284_p5 = pnand %p2282_p4, %p2279_p3 }
  0x14   :  { %2287 = shalt.err (!%p2284_p5)
}
  0x15   :  { %s2288_s0 = scalar_lea.vmem %s37_s12, 4096  ;;  %p2293_p7 = scmp.lt.s32.totalorder %s37_s12, %s37_s12 }
  0x16   :  { %p2289_p6 = scmp.ne.s32.totalorder %s37_s12, %s2288_s0  ;;  %p2294_p8 = scmp.lt.s32.totalorder %s2288_s0, %s2288_s0 }
  0x18   :  { %p2295_p9 = por %p2294_p8, %p2293_p7 }
  0x1a   :  { %p2296_p10 = pnand %p2295_p9, %p2289_p6 }
  0x1c   :  { %2299 = shalt.err (!%p2296_p10)
}
  0x1d   :  { %s2376_s20 = smov 256   ;;  %s2377_s21 = smov 16  }
  0x1e   :  { %42 = dma.hbm_to_vmem [thread:$0]  %s3086_s2, 4096, %s37_s12, [#allocation9], %s2376_s20, %s2376_s20, %s2377_s21  }
  0x1f   :  { %s2378_s24 = smov [#allocation6]   ;;  %s2300_s28 = scalar_lea.hbm %s3085_s1, 896 }
  0x20   :  { %s24_s25 = sshll.u32 %s2378_s24, 4  ;;  %p2301_p11 = scmp.ne.s32.totalorder %s3085_s1, %s2300_s28  ;;  %s25_s25 = int_to_ptr.vmem [resolvable:$true] %s24_s25 }
  0x21   :  { %p2304_p12 = scmp.lt.u32.totalorder %s2300_s28, %s3085_s1 }
  0x23   :  { %p2306_p13 = pnand %p2304_p12, %p2301_p11 }
  0x25   :  { %2309 = shalt.err (!%p2306_p13)
}
  0x26   :  { %s2310_s10 = scalar_lea.vmem %s25_s25, 896  ;;  %p2315_p1 = scmp.lt.s32.totalorder %s25_s25, %s25_s25 }
  0x27   :  { %p2311_p0 = scmp.ne.s32.totalorder %s25_s25, %s2310_s10  ;;  %p2316_p2 = scmp.lt.s32.totalorder %s2310_s10, %s2310_s10 }
  0x29   :  { %p2317_p3 = por %p2316_p2, %p2315_p1 }
  0x2b   :  { %p2318_p4 = pnand %p2317_p3, %p2311_p0 }
  0x2d   :  { %2321 = shalt.err (!%p2318_p4)
}
  0x2e   :  { %s2379_s2 = smov 128   ;;  %s2380_s11 = smov 8  }
  0x2f   :  { %30 = dma.hbm_to_vmem [thread:$0]  %s3085_s1, 896, %s25_s25, [#allocation7], %s2379_s2, %s2379_s2, %s2380_s11  }
  0x30   :  { %s2381_s14 = smov [#allocation10]   ;;  %s2382_s16 = smov [#allocation11]  }
  0x31   :  { %s48_s15 = sshll.u32 %s2381_s14, 4  ;;  %s62_s17 = sshll.u32 %s2382_s16, 4  ;;  %s49_s15 = int_to_ptr.vmem [resolvable:$true] %s48_s15  ;;  %s2469_s17 = int_to_ptr.vmem [resolvable:$true] %s62_s17 }
  0x32   :  { %s2322_s0 = scalar_lea.hbm %s3087_s3, 4096 }
  0x33   :  { %p2323_p5 = scmp.ne.s32.totalorder %s3087_s3, %s2322_s0  ;;  %p2326_p6 = scmp.lt.u32.totalorder %s2322_s0, %s3087_s3 }
  0x35   :  { %p2328_p7 = pnand %p2326_p6, %p2323_p5 }
  0x37   :  { %2331 = shalt.err (!%p2328_p7)
}
  0x38   :  { %s2332_s1 = scalar_lea.vmem %s49_s15, 4096  ;;  %p2337_p9 = scmp.lt.s32.totalorder %s49_s15, %s49_s15 }
  0x39   :  { %p2333_p8 = scmp.ne.s32.totalorder %s49_s15, %s2332_s1  ;;  %p2338_p10 = scmp.lt.s32.totalorder %s2332_s1, %s2332_s1 }
  0x3b   :  { %p2339_p11 = por %p2338_p10, %p2337_p9 }
  0x3d   :  { %p2340_p12 = pnand %p2339_p11, %p2333_p8 }
  0x3f   :  { %2343 = shalt.err (!%p2340_p12)
}
  0x40   :  { %54 = dma.hbm_to_vmem [thread:$0]  %s3087_s3, 4096, %s49_s15, [#allocation9], %s2376_s20, %s2376_s20, %s2377_s21  }
  0x41   :  { %s2344_s30 = scalar_lea.hbm %s3089_s5, 2048 }
  0x42   :  { %p2345_p13 = scmp.ne.s32.totalorder %s3089_s5, %s2344_s30  ;;  %p2348_p0 = scmp.lt.u32.totalorder %s2344_s30, %s3089_s5 }
  0x44   :  { %p2350_p1 = pnand %p2348_p0, %p2345_p13 }
  0x46   :  { %2353 = shalt.err (!%p2350_p1)
}
  0x47   :  { %s2354_s13 = scalar_lea.vmem %s2469_s17, 2048  ;;  %p2359_p3 = scmp.lt.s32.totalorder %s2469_s17, %s2469_s17 }
  0x48   :  { %p2355_p2 = scmp.ne.s32.totalorder %s2469_s17, %s2354_s13  ;;  %p2360_p4 = scmp.lt.s32.totalorder %s2354_s13, %s2354_s13 }
  0x4a   :  { %p2361_p5 = por %p2360_p4, %p2359_p3 }
  0x4c   :  { %p2362_p6 = pnand %p2361_p5, %p2355_p2 }
  0x4e   :  { %2365 = shalt.err (!%p2362_p6)
}
  0x4f   :  { %68 = dma.hbm_to_vmem [thread:$0]  %s3089_s5, 2048, %s2469_s17, [#allocation12], %s2379_s2, %s2379_s2, %s2380_s11  }
  0x50   :  { %2368 = dma.done.wait [#allocation7], 896  }
  0x51   :  { %2369 = vsyncadd [#allocation7], 4294966400 }
  0x52   :  { %2370 = dma.done.wait [#allocation9], 8192  }
  0x53   :  { %2371 = vsyncadd [#allocation9], 4294959104 }
  0x54   :  { %2372 = dma.done.wait [#allocation12], 2048  }
  0x55   :  { %2373 = vsyncadd [#allocation12], 4294965248  ;;  %v3093_v0 = vmov 0   ;;  %v3092_v1 = vmov 0.0   ;;  %v2012_v2 = vld [vmem:[#allocation8 + $0x4] ss:$16 sps:$4 sm:$0xff]  }
  0x56   :  { %414 = vmatprep.mubr.bf16.mxu0 %v3093_v0  ;;  %487 = vmatprep.mubr.bf16.mxu1 %v3093_v0  ;;  %84 = vst [vmem:[#allocation2] sm:$0xff] %v3092_v1  ;;  %85 = vst [vmem:[#allocation2 + $0x8] sm:$0xff] %v3092_v1  ;;  %v2014_v3 = vld [vmem:[#allocation8 + $0xc] ss:$16 sps:$4 sm:$0xff]   ;;  %v2016_v4 = vld [vmem:[#allocation8] ss:$16 sps:$4 sm:$0xff]  }
  0x57   :  { %86 = vst [vmem:[#allocation2 + $0x10] sm:$0xff] %v3092_v1  ;;  %87 = vst [vmem:[#allocation2 + $0x18] sm:$0xff] %v3092_v1  ;;  %382 = vmatprep.subr.bf16.mxu0 %v2012_v2  ;;  %v2017_v5 = vld [vmem:[#allocation8 + $0x8] ss:$16 sps:$4 sm:$0xff]   ;;  %455 = vmatprep.subr.bf16.mxu1 %v2014_v3  ;;  %v2018_v6 = vld [vmem:[#allocation8 + $0x24] ss:$16 sps:$4 sm:$0xff]  }
  0x58   :  { %88 = vst [vmem:[#allocation2 + $0x20] sm:$0xff] %v3092_v1  ;;  %89 = vst [vmem:[#allocation2 + $0x28] sm:$0xff] %v3092_v1  ;;  %383 = vmatpush1.bf16.msra.mxu0 %v2016_v4  ;;  %456 = vmatpush1.bf16.msra.mxu1 %v2017_v5  ;;  %v2020_v7 = vld [vmem:[#allocation8 + $0x2c] ss:$16 sps:$4 sm:$0xff]   ;;  %v2022_v8 = vld [vmem:[#allocation8 + $0x20] ss:$16 sps:$4 sm:$0xff]  }
  0x59   :  { %90 = vst [vmem:[#allocation2 + $0x30] sm:$0xff] %v3092_v1  ;;  %91 = vst [vmem:[#allocation2 + $0x38] sm:$0xff] %v3092_v1  ;;  %384 = vmatprep.subr.bf16.mxu0 %v2018_v6  ;;  %v2023_v9 = vld [vmem:[#allocation8 + $0x28] ss:$16 sps:$4 sm:$0xff]   ;;  %457 = vmatprep.subr.bf16.mxu1 %v2020_v7  ;;  %v2024_v10 = vld [vmem:[#allocation8 + $0x44] ss:$16 sps:$4 sm:$0xff]  }
  0x5a   :  { %v2026_v11 = vld [vmem:[#allocation8 + $0x4c] ss:$16 sps:$4 sm:$0xff]   ;;  %v2028_v12 = vld [vmem:[#allocation8 + $0x40] ss:$16 sps:$4 sm:$0xff]   ;;  %v2029_v13 = vld [vmem:[#allocation8 + $0x48] ss:$16 sps:$4 sm:$0xff]  }
  0x5b   :  { %v2030_v14 = vld [vmem:[#allocation8 + $0x64] ss:$16 sps:$4 sm:$0xff]   ;;  %s2516_s5 = sld [smem:[#allocation5]]  ;;  %v2032_v15 = vld [vmem:[#allocation8 + $0x6c] ss:$16 sps:$4 sm:$0xff]   ;;  %s2520_s2 = sld [smem:[#allocation5 + $0x1]] }
  0x5c   :  { %385 = vmatpush1.bf16.msra.mxu0 %v2022_v8  ;;  %458 = vmatpush1.bf16.msra.mxu1 %v2023_v9  ;;  %s2518_s21 = sld [smem:[#allocation5 + $0x80]]  ;;  %s2522_s11 = sld [smem:[#allocation5 + $0x81]]  ;;  %v2034_v16 = vld [vmem:[#allocation8 + $0x60] ss:$16 sps:$4 sm:$0xff]   ;;  %v2035_v17 = vld [vmem:[#allocation8 + $0x68] ss:$16 sps:$4 sm:$0xff]  }
  0x5d   :  { %386 = vmatprep.subr.bf16.mxu0 %v2024_v10  ;;  %459 = vmatprep.subr.bf16.mxu1 %v2026_v11  ;;  %s2524_s14 = sld [smem:[#allocation5 + $0x2]]  ;;  %v2036_v18 = vld [vmem:[#allocation8 + $0x84] ss:$16 sps:$4 sm:$0xff]   ;;  %v2038_v19 = vld [vmem:[#allocation8 + $0x8c] ss:$16 sps:$4 sm:$0xff]   ;;  %s2528_s16 = sld [smem:[#allocation5 + $0x3]] }
  0x5e   :  { %s2526_s15 = sld [smem:[#allocation5 + $0x82]]  ;;  %s2530_s17 = sld [smem:[#allocation5 + $0x83]]  ;;  %v2040_v20 = vld [vmem:[#allocation8 + $0x80] ss:$16 sps:$4 sm:$0xff]   ;;  %v2041_v21 = vld [vmem:[#allocation8 + $0x88] ss:$16 sps:$4 sm:$0xff]  }
  0x5f   :  { %s2532_s18 = sld [smem:[#allocation5 + $0x4]]  ;;  %v2042_v22 = vld [vmem:[#allocation8 + $0xa4] ss:$16 sps:$4 sm:$0xff]   ;;  %v2044_v23 = vld [vmem:[#allocation8 + $0xac] ss:$16 sps:$4 sm:$0xff]   ;;  %s2536_s0 = sld [smem:[#allocation5 + $0x5]] }
  0x60   :  { %387 = vmatpush1.bf16.msra.mxu0 %v2028_v12  ;;  %460 = vmatpush1.bf16.msra.mxu1 %v2029_v13  ;;  %s2534_s19 = sld [smem:[#allocation5 + $0x84]]  ;;  %v2046_v24 = vld [vmem:[#allocation8 + $0xa0] ss:$16 sps:$4 sm:$0xff]   ;;  %v2047_v25 = vld [vmem:[#allocation8 + $0xa8] ss:$16 sps:$4 sm:$0xff]   ;;  %s2542_s1 = sld [smem:[#allocation5 + $0x85]] }
  0x61   :  { %388 = vmatprep.subr.bf16.mxu0 %v2030_v14  ;;  %461 = vmatprep.subr.bf16.mxu1 %v2032_v15  ;;  %v2048_v26 = vld [vmem:[#allocation8 + $0xc4] ss:$16 sps:$4 sm:$0xff]   ;;  %v2050_v27 = vld [vmem:[#allocation8 + $0xcc] ss:$16 sps:$4 sm:$0xff]   ;;  %s93_s22 = scalar_lea.vmem [#allocation6], %s2516_s5  ;;  %s101_s24 = scalar_lea.vmem [#allocation6], %s2520_s2 }
  0x62   :  { %v94_v28 = vld [vmem:[%s93_s22] sm:$0x1]  ;;  %s97_s23 = scalar_lea.vmem [#allocation6], %s2518_s21  ;;  %s105_s26 = scalar_lea.vmem [#allocation6], %s2522_s11  ;;  %v2052_v32 = vld [vmem:[#allocation8 + $0xc0] ss:$16 sps:$4 sm:$0xff]  }
  0x63   :  { %v98_v29 = vld [vmem:[%s97_s23] sm:$0x1]  ;;  %95 = vst [vmem:[#allocation2] sm:$0x1] %v94_v28  ;;  %v2054_v34 = vld [vmem:[#allocation8 + $0xe4] ss:$16 sps:$4 sm:$0xff]  }
  0x64   :  { %389 = vmatpush1.bf16.msra.mxu0 %v2034_v16  ;;  %462 = vmatpush1.bf16.msra.mxu1 %v2035_v17  ;;  %99 = vst [vmem:[#allocation2 + $0x1] sm:$0x1] %v98_v29  ;;  %v102_v30 = vld [vmem:[%s101_s24] sm:$0x1]  ;;  %v2056_v35 = vld [vmem:[#allocation8 + $0xec] ss:$16 sps:$4 sm:$0xff]  }
  0x65   :  { %390 = vmatprep.subr.bf16.mxu0 %v2036_v18  ;;  %463 = vmatprep.subr.bf16.mxu1 %v2038_v19  ;;  %v106_v31 = vld [vmem:[%s105_s26] sm:$0x1]  ;;  %103 = vst [vmem:[#allocation2 + $0x8] sm:$0x1] %v102_v30  ;;  %v2058_v36 = vld [vmem:[#allocation8 + $0xe0] ss:$16 sps:$4 sm:$0xff]  }
  0x66   :  { %107 = vst [vmem:[#allocation2 + $0x9] sm:$0x1] %v106_v31  ;;  %v2053_v33 = vld [vmem:[#allocation8 + $0xc8] ss:$16 sps:$4 sm:$0xff]   ;;  %v2544_v38 = vld [vmem:[#allocation10 + $0x4] ss:$16 sps:$4 sm:$0xff]  }
  0x67   :  { %v2059_v37 = vld [vmem:[#allocation8 + $0xe8] ss:$16 sps:$4 sm:$0xff]   ;;  %v2546_v39 = vld [vmem:[#allocation10 + $0xc] ss:$16 sps:$4 sm:$0xff]   ;;  %s109_s25 = scalar_lea.vmem [#allocation6], %s2524_s14  ;;  %s113_s27 = scalar_lea.vmem [#allocation6], %s2526_s15 }
  0x68   :  { %391 = vmatpush1.bf16.msra.mxu0 %v2040_v20  ;;  %464 = vmatpush1.bf16.msra.mxu1 %v2041_v21  ;;  %v110_v40 = vld [vmem:[%s109_s25] sm:$0x1]  ;;  %s117_s28 = scalar_lea.vmem [#allocation6], %s2528_s16  ;;  %s121_s29 = scalar_lea.vmem [#allocation6], %s2530_s17  ;;  %v2556_v47 = vld [vmem:[#allocation10] ss:$16 sps:$4 sm:$0xff]  }
  0x69   :  { %392 = vmatprep.subr.bf16.mxu0 %v2042_v22  ;;  %465 = vmatprep.subr.bf16.mxu1 %v2044_v23  ;;  %v114_v41 = vld [vmem:[%s113_s27] sm:$0x1]  ;;  %111 = vst [vmem:[#allocation2 + $0x10] sm:$0x1] %v110_v40  ;;  %s2552_s30 = sld [smem:[#allocation5 + $0x6]]  ;;  %s2558_s9 = sld [smem:[#allocation5 + $0x7]] }
  0x6a   :  { %v118_v42 = vld [vmem:[%s117_s28] sm:$0x1]  ;;  %115 = vst [vmem:[#allocation2 + $0x11] sm:$0x1] %v114_v41  ;;  %s2554_s8 = sld [smem:[#allocation5 + $0x86]]  ;;  %s2568_s10 = sld [smem:[#allocation5 + $0x87]] }
  0x6b   :  { %v156_v43 = vld [vmem:[#allocation2] sm:$0xff]  ;;  %119 = vst [vmem:[#allocation2 + $0x18] sm:$0x1] %v118_v42  ;;  %v122_v44 = vld [vmem:[%s121_s29] sm:$0x1]  ;;  %s125_s12 = scalar_lea.vmem [#allocation6], %s2532_s18 }
  0x6c   :  { %393 = vmatpush1.bf16.msra.mxu0 %v2046_v24  ;;  %466 = vmatpush1.bf16.msra.mxu1 %v2047_v25  ;;  %123 = vst [vmem:[#allocation2 + $0x19] sm:$0x1] %v122_v44  ;;  %v2560_v48 = vld [vmem:[#allocation10 + $0x8] ss:$16 sps:$4 sm:$0xff]   ;;  %v2562_v49 = vld [vmem:[#allocation10 + $0x24] ss:$16 sps:$4 sm:$0xff]  }
  0x6d   :  { %394 = vmatprep.subr.bf16.mxu0 %v2048_v26  ;;  %467 = vmatprep.subr.bf16.mxu1 %v2050_v27  ;;  %v157_v45 = vld [vmem:[#allocation2 + $0x8] sm:$0xff]  ;;  %v2566_v50 = vld [vmem:[#allocation10 + $0x2c] ss:$16 sps:$4 sm:$0xff]   ;;  %v2572_v52 = vld [vmem:[#allocation10 + $0x28] ss:$16 sps:$4 sm:$0xff]   ;;  %s129_s13 = scalar_lea.vmem [#allocation6], %s2534_s19 }
  0x6e   :  { %v164_v46 = vpack.c.bf16 %v157_v45, %v156_v43  ;;  %v2570_v51 = vld [vmem:[#allocation10 + $0x20] ss:$16 sps:$4 sm:$0xff]   ;;  %v2574_v53 = vld [vmem:[#allocation10 + $0x44] ss:$16 sps:$4 sm:$0xff]   ;;  %v2576_v54 = vld [vmem:[#allocation10 + $0x4c] ss:$16 sps:$4 sm:$0xff]  }
  0x6f   :  { %v126_v55 = vld [vmem:[%s125_s12] sm:$0x1]  ;;  %s133_s3 = scalar_lea.vmem [#allocation6], %s2536_s0  ;;  %s137_s20 = scalar_lea.vmem [#allocation6], %s2542_s1  ;;  %v2588_v62 = vld [vmem:[#allocation10 + $0x40] ss:$16 sps:$4 sm:$0xff]  }
  0x70   :  { %395 = vmatpush1.bf16.msra.mxu0 %v2052_v32  ;;  %468 = vmatpush1.bf16.msra.mxu1 %v2053_v33  ;;  %v130_v56 = vld [vmem:[%s129_s13] sm:$0x1]  ;;  %127 = vst [vmem:[#allocation2 + $0x20] sm:$0x1] %v126_v55  ;;  %v2594_v2 = vld [vmem:[#allocation10 + $0x64] ss:$16 sps:$4 sm:$0xff]   ;;  %v202_v32 = vlaneseq }
  0x71   :  { %396 = vmatprep.subr.bf16.mxu0 %v2054_v34  ;;  %469 = vmatprep.subr.bf16.mxu1 %v2056_v35  ;;  %v158_v57 = vld [vmem:[#allocation2 + $0x10] sm:$0xff]  ;;  %131 = vst [vmem:[#allocation2 + $0x21] sm:$0x1] %v130_v56  ;;  %v2600_v4 = vld [vmem:[#allocation10 + $0x60] ss:$16 sps:$4 sm:$0xff]   ;;  %s141_s5 = scalar_lea.vmem [#allocation6], %s2552_s30 }
  0x72   :  { %v134_v58 = vld [vmem:[%s133_s3] sm:$0x1]  ;;  %v2598_v3 = vld [vmem:[#allocation10 + $0x6c] ss:$16 sps:$4 sm:$0xff]   ;;  %v2605_v8 = vld [vmem:[#allocation10 + $0x84] ss:$16 sps:$4 sm:$0xff]  }
  0x73   :  { %v138_v59 = vld [vmem:[%s137_s20] sm:$0x1]  ;;  %v159_v60 = vld [vmem:[#allocation2 + $0x18] sm:$0xff]  ;;  %135 = vst [vmem:[#allocation2 + $0x28] sm:$0x1] %v134_v58  ;;  %s145_s21 = scalar_lea.vmem [#allocation6], %s2554_s8 }
  0x74   :  { %397 = vmatpush1.bf16.msra.mxu0 %v2058_v36  ;;  %470 = vmatpush1.bf16.msra.mxu1 %v2059_v37  ;;  %139 = vst [vmem:[#allocation2 + $0x29] sm:$0x1] %v138_v59  ;;  %v165_v61 = vpack.c.bf16 %v159_v60, %v158_v57  ;;  %v2590_v63 = vld [vmem:[#allocation10 + $0x48] ss:$16 sps:$4 sm:$0xff]   ;;  %s149_s2 = scalar_lea.vmem [#allocation6], %s2558_s9  ;;  %s153_s11 = scalar_lea.vmem [#allocation6], %s2568_s10 }
  0x75   :  { %759 = vmatprep.subr.bf16.mxu0 %v2544_v38  ;;  %800 = vmatprep.subr.bf16.mxu1 %v2546_v39  ;;  %v2602_v5 = vld [vmem:[#allocation10 + $0x68] ss:$16 sps:$4 sm:$0xff]   ;;  %v2614_v13 = vld [vmem:[#allocation10 + $0x8c] ss:$16 sps:$4 sm:$0xff]   ;;  %v2618_v15 = vld [vmem:[#allocation10 + $0x80] ss:$16 sps:$4 sm:$0xff]  }
  0x76   :  { %v142_v6 = vld [vmem:[%s141_s5] sm:$0x1]  ;;  %v2626_v17 = vld [vmem:[#allocation10 + $0xa4] ss:$16 sps:$4 sm:$0xff]   ;;  %v2628_v18 = vld [vmem:[#allocation10 + $0xac] ss:$16 sps:$4 sm:$0xff]  }
  0x77   :  { %415 = vmatmul.mubr.bf16.vlgmr.msra.gmra.mrb[0].mxu0 %v164_v46  ;;  %488 = vmatmul.mubr.bf16.vlgmr.msra.gmra.mrb[0].mxu1 %v164_v46  ;;  %143 = vst [vmem:[#allocation2 + $0x30] sm:$0x1] %v142_v6  ;;  %v146_v9 = vld [vmem:[%s145_s21] sm:$0x1]  ;;  %v2630_v19 = vld [vmem:[#allocation10 + $0xa0] ss:$16 sps:$4 sm:$0xff]  }
  0x78   :  { %760 = vmatpush1.bf16.msra.mxu0 %v2556_v47  ;;  %801 = vmatpush1.bf16.msra.mxu1 %v2560_v48  ;;  %v160_v7 = vld [vmem:[#allocation2 + $0x20] sm:$0xff]  ;;  %v150_v10 = vld [vmem:[%s149_s2] sm:$0x1]  ;;  %147 = vst [vmem:[#allocation2 + $0x31] sm:$0x1] %v146_v9  ;;  %v203_v33 = vshrl.u32 %v202_v32, 7 }
  0x79   :  { %761 = vmatprep.subr.bf16.mxu0 %v2562_v49  ;;  %802 = vmatprep.subr.bf16.mxu1 %v2566_v50  ;;  %151 = vst [vmem:[#allocation2 + $0x38] sm:$0x1] %v150_v10  ;;  %v154_v12 = vld [vmem:[%s153_s11] sm:$0x1]  ;;  %v2638_v23 = vld [vmem:[#allocation10 + $0xc4] ss:$16 sps:$4 sm:$0xff]  }
  0x7a   :  { %424 = vmatprep.mubr.bf16.mxu0 %v3093_v0  ;;  %497 = vmatprep.mubr.bf16.mxu1 %v3093_v0  ;;  %155 = vst [vmem:[#allocation2 + $0x39] sm:$0x1] %v154_v12  ;;  %v2622_v16 = vld [vmem:[#allocation10 + $0x88] ss:$16 sps:$4 sm:$0xff]   ;;  %v2640_v24 = vld [vmem:[#allocation10 + $0xcc] ss:$16 sps:$4 sm:$0xff]  }
  0x7b   :  { %v161_v11 = vld [vmem:[#allocation2 + $0x28] sm:$0xff]  ;;  %v2634_v20 = vld [vmem:[#allocation10 + $0xa8] ss:$16 sps:$4 sm:$0xff]   ;;  %v2654_v29 = vld [vmem:[#allocation10 + $0xec] ss:$16 sps:$4 sm:$0xff]   ;;  %v212_v34 = vsub.s32 2, %v203_v33 }
  0x7c   :  { %762 = vmatpush1.bf16.msra.mxu0 %v2570_v51  ;;  %803 = vmatpush1.bf16.msra.mxu1 %v2572_v52  ;;  %v166_v14 = vpack.c.bf16 %v161_v11, %v160_v7  ;;  %v2646_v26 = vld [vmem:[#allocation10 + $0xc0] ss:$16 sps:$4 sm:$0xff]   ;;  %v2648_v27 = vld [vmem:[#allocation10 + $0xc8] ss:$16 sps:$4 sm:$0xff]   ;;  %v2652_v28 = vld [vmem:[#allocation10 + $0xe4] ss:$16 sps:$4 sm:$0xff]  }
  0x7d   :  { %763 = vmatprep.subr.bf16.mxu0 %v2574_v53  ;;  %804 = vmatprep.subr.bf16.mxu1 %v2576_v54  ;;  %v2658_v30 = vld [vmem:[#allocation10 + $0xe0] ss:$16 sps:$4 sm:$0xff]   ;;  %v2660_v31 = vld [vmem:[#allocation10 + $0xe8] ss:$16 sps:$4 sm:$0xff]   ;;  %v216_v35 = vsub.s32 3, %v203_v33  ;;  %v204_v36 = vsub.s32 0, %v203_v33 }
  0x7e   :  { %v200_v37 = vld [vmem:[%s3088_s4] sm:$0xf]  ;;  %v208_v40 = vsub.s32 1, %v203_v33  ;;  %vm2386_vm0 = vmmov 0  }
  0x7f   :  { %425 = vmatmul.mubr.bf16.gmra.mrb[4].mxu0 %v165_v61  ;;  %498 = vmatmul.mubr.bf16.gmra.mrb[4].mxu1 %v165_v61  ;;  %v162_v21 = vld [vmem:[#allocation2 + $0x30] sm:$0xff]  ;;  %v2709_v41 = vrot.slane %v200_v37, %v212_v34  ;;  %v2715_v44 = vrot.slane %v200_v37, %v216_v35  ;;  %v205_v45 = vrot.slane %v200_v37, %v204_v36 }
  0x80   :  { %764 = vmatpush1.bf16.msra.mxu0 %v2588_v62  ;;  %805 = vmatpush1.bf16.msra.mxu1 %v2590_v63  ;;  %v209_v56 = vrot.slane %v200_v37, %v208_v40 }
  0x81   :  { %765 = vmatprep.subr.bf16.mxu0 %v2594_v2  ;;  %806 = vmatprep.subr.bf16.mxu1 %v2598_v3  ;;  %v163_v22 = vld [vmem:[#allocation2 + $0x38] sm:$0xff] }
  0x82   :  { %434 = vmatprep.mubr.bf16.mxu0 %v3093_v0  ;;  %507 = vmatprep.mubr.bf16.mxu1 %v3093_v0  ;;  %v167_v25 = vpack.c.bf16 %v163_v22, %v162_v21 }
  0x84   :  { %766 = vmatpush1.bf16.msra.mxu0 %v2600_v4  ;;  %807 = vmatpush1.bf16.msra.mxu1 %v2602_v5 }
  0x85   :  { %767 = vmatprep.subr.bf16.mxu0 %v2605_v8  ;;  %808 = vmatprep.subr.bf16.mxu1 %v2614_v13 }
  0x87   :  { %435 = vmatmul.mubr.bf16.gmra.mrb[8].mxu0 %v166_v14  ;;  %508 = vmatmul.mubr.bf16.gmra.mrb[8].mxu1 %v166_v14 }
  0x88   :  { %768 = vmatpush1.bf16.msra.mxu0 %v2618_v15  ;;  %809 = vmatpush1.bf16.msra.mxu1 %v2622_v16 }
  0x89   :  { %769 = vmatprep.subr.bf16.mxu0 %v2626_v17  ;;  %810 = vmatprep.subr.bf16.mxu1 %v2628_v18 }
  0x8a   :  { %444 = vmatprep.mubr.bf16.mxu0 %v3093_v0  ;;  %517 = vmatprep.mubr.bf16.mxu1 %v3093_v0 }
  0x8c   :  { %770 = vmatpush1.bf16.msra.mxu0 %v2630_v19  ;;  %811 = vmatpush1.bf16.msra.mxu1 %v2634_v20 }
  0x8d   :  { %771 = vmatprep.subr.bf16.mxu0 %v2638_v23  ;;  %812 = vmatprep.subr.bf16.mxu1 %v2640_v24 }
  0x8f   :  { %445 = vmatmul.mubr.bf16.gmra.mrb[12].mxu0 %v167_v25  ;;  %518 = vmatmul.mubr.bf16.gmra.mrb[12].mxu1 %v167_v25 }
  0x90   :  { %772 = vmatpush1.bf16.msra.mxu0 %v2646_v26  ;;  %813 = vmatpush1.bf16.msra.mxu1 %v2648_v27 }
  0x91   :  { %773 = vmatprep.subr.bf16.mxu0 %v2652_v28  ;;  %814 = vmatprep.subr.bf16.mxu1 %v2654_v29 }
  0x92   :  { %791 = vmatprep.mubr.bf16.mxu0 %v3093_v0  ;;  %832 = vmatprep.mubr.bf16.mxu1 %v3093_v0 }
  0x94   :  { %774 = vmatpush1.bf16.msra.mxu0 %v2658_v30  ;;  %815 = vmatpush1.bf16.msra.mxu1 %v2660_v31 }
  0x95   :  { %877 = vmatprep.subr.bf16.mxu0 %v2544_v38  ;;  %918 = vmatprep.subr.bf16.mxu1 %v2546_v39 }
  0x97   :  { %792 = vmatmul.mubr.bf16.vlgmr.msra.gmra.mrb[16].mxu0 %v3093_v0  ;;  %833 = vmatmul.mubr.bf16.vlgmr.msra.gmra.mrb[16].mxu1 %v3093_v0 }
  0x98   :  { %878 = vmatpush1.bf16.msra.mxu0 %v2556_v47  ;;  %919 = vmatpush1.bf16.msra.mxu1 %v2560_v48 }
  0x99   :  { %879 = vmatprep.subr.bf16.mxu0 %v2562_v49  ;;  %920 = vmatprep.subr.bf16.mxu1 %v2566_v50 }
  0x9a   :  { %909 = vmatprep.mubr.bf16.mxu0 %v3093_v0  ;;  %950 = vmatprep.mubr.bf16.mxu1 %v3093_v0 }
  0x9c   :  { %880 = vmatpush1.bf16.msra.mxu0 %v2570_v51  ;;  %921 = vmatpush1.bf16.msra.mxu1 %v2572_v52 }
  0x9d   :  { %881 = vmatprep.subr.bf16.mxu0 %v2574_v53  ;;  %922 = vmatprep.subr.bf16.mxu1 %v2576_v54 }
  0xa0   :  { %882 = vmatpush1.bf16.msra.mxu0 %v2588_v62  ;;  %923 = vmatpush1.bf16.msra.mxu1 %v2590_v63 }
  0xa1   :  { %883 = vmatprep.subr.bf16.mxu0 %v2594_v2  ;;  %924 = vmatprep.subr.bf16.mxu1 %v2598_v3 }
  0xa4   :  { %884 = vmatpush1.bf16.msra.mxu0 %v2600_v4  ;;  %925 = vmatpush1.bf16.msra.mxu1 %v2602_v5 }
  0xa5   :  { %885 = vmatprep.subr.bf16.mxu0 %v2605_v8  ;;  %926 = vmatprep.subr.bf16.mxu1 %v2614_v13 }
  0xa8   :  { %886 = vmatpush1.bf16.msra.mxu0 %v2618_v15  ;;  %927 = vmatpush1.bf16.msra.mxu1 %v2622_v16 }
  0xa9   :  { %887 = vmatprep.subr.bf16.mxu0 %v2626_v17  ;;  %928 = vmatprep.subr.bf16.mxu1 %v2628_v18 }
  0xac   :  { %888 = vmatpush1.bf16.msra.mxu0 %v2630_v19  ;;  %929 = vmatpush1.bf16.msra.mxu1 %v2634_v20 }
  0xad   :  { %889 = vmatprep.subr.bf16.mxu0 %v2638_v23  ;;  %930 = vmatprep.subr.bf16.mxu1 %v2640_v24 }
  0xb0   :  { %890 = vmatpush1.bf16.msra.mxu0 %v2646_v26  ;;  %931 = vmatpush1.bf16.msra.mxu1 %v2648_v27 }
  0xb1   :  { %891 = vmatprep.subr.bf16.mxu0 %v2652_v28  ;;  %932 = vmatprep.subr.bf16.mxu1 %v2654_v29 }
  0xb4   :  { %892 = vmatpush1.bf16.msra.mxu0 %v2658_v30  ;;  %933 = vmatpush1.bf16.msra.mxu1 %v2660_v31 }
  0xb5   :  { %995 = vmatprep.subr.bf16.mxu0 %v2544_v38  ;;  %1036 = vmatprep.subr.bf16.mxu1 %v2546_v39 }
 0x14a   :  { %v2711_v42 = vpop.f32.mrb[0].mxu0  ;;  %v2713_v43 = vpop.f32.mrb[0].mxu1 }
 0x14b   :  { %v418_v46 = vpop.f32.mrb[1].mxu0  ;;  %v491_v55 = vpop.f32.mrb[1].mxu1 }
 0x14c   :  { %v420_v57 = vpop.f32.mrb[2].mxu0  ;;  %v493_v58 = vpop.f32.mrb[2].mxu1 }
 0x14d   :  { %v2717_v59 = vadd.f32 %v420_v57, %v205_v45  ;;  %v422_v60 = vpop.f32.mrb[3].mxu0  ;;  %v2720_v61 = vadd.f32 %v493_v58, %v2709_v41  ;;  %v495_v6 = vpop.f32.mrb[3].mxu1 }
 0x14e   :  { %v2722_v7 = vadd.f32 %v422_v60, %v209_v56  ;;  %v2725_v9 = vadd.f32 %v495_v6, %v2715_v44 }
 0x152   :  { %v426_v10 = vpop.f32.mrb[4].mxu0  ;;  %v499_v11 = vpop.f32.mrb[4].mxu1 }
 0x153   :  { %v2727_v12 = vadd.f32 %v426_v10, %v205_v45  ;;  %v428_v14 = vpop.f32.mrb[5].mxu0  ;;  %v2730_v21 = vadd.f32 %v499_v11, %v2709_v41  ;;  %v501_v22 = vpop.f32.mrb[5].mxu1 }
 0x154   :  { %v2732_v25 = vadd.f32 %v428_v14, %v209_v56  ;;  %v430_v32 = vpop.f32.mrb[6].mxu0  ;;  %v2735_v33 = vadd.f32 %v501_v22, %v2715_v44  ;;  %v503_v34 = vpop.f32.mrb[6].mxu1 }
 0x155   :  { %v2737_v35 = vadd.f32 %v430_v32, %v205_v45  ;;  %v432_v36 = vpop.f32.mrb[7].mxu0  ;;  %v2740_v37 = vadd.f32 %v503_v34, %v2709_v41  ;;  %v505_v40 = vpop.f32.mrb[7].mxu1 }
 0x156   :  { %3095 = vst [vmem:[#allocation17_spill] sm:$0xff] %v2735_v33  ;;  %v2742_v57 = vadd.f32 %v432_v36, %v209_v56  ;;  %v2745_v58 = vadd.f32 %v505_v40, %v2715_v44 }
 0x157   :  { %3096 = vst [vmem:[#allocation18_spill] sm:$0xff] %v2737_v35  ;;  %3097 = vst [vmem:[#allocation19_spill] sm:$0xff] %v2740_v37 }
 0x158   :  { %3098 = vst [vmem:[#allocation20_spill] sm:$0xff] %v2742_v57  ;;  %3099 = vst [vmem:[#allocation21_spill] sm:$0xff] %v2745_v58 }
 0x15a   :  { %v436_v60 = vpop.f32.mrb[8].mxu0  ;;  %v509_v6 = vpop.f32.mrb[8].mxu1 }
 0x15b   :  { %v2747_v10 = vadd.f32 %v436_v60, %v205_v45  ;;  %v438_v11 = vpop.f32.mrb[9].mxu0  ;;  %v2750_v14 = vadd.f32 %v509_v6, %v2709_v41  ;;  %v511_v22 = vpop.f32.mrb[9].mxu1 }
 0x15c   :  { %v2752_v32 = vadd.f32 %v438_v11, %v209_v56  ;;  %v440_v1 = vpop.f32.mrb[10].mxu0  ;;  %v2755_v34 = vadd.f32 %v511_v22, %v2715_v44  ;;  %v513_v36 = vpop.f32.mrb[10].mxu1 }
 0x15d   :  { %3100 = vst [vmem:[#allocation22_spill] sm:$0xff] %v2747_v10  ;;  %3101 = vst [vmem:[#allocation23_spill] sm:$0xff] %v2750_v14  ;;  %v2757_v0 = vadd.f32 %v440_v1, %v205_v45  ;;  %v442_v40 = vpop.f32.mrb[11].mxu0  ;;  %v2760_v58 = vadd.f32 %v513_v36, %v2709_v41  ;;  %v515_v60 = vpop.f32.mrb[11].mxu1 }
 0x15e   :  { %3102 = vst [vmem:[#allocation24_spill] sm:$0xff] %v2752_v32  ;;  %3103 = vst [vmem:[#allocation25_spill] sm:$0xff] %v2755_v34  ;;  %v2762_v10 = vadd.f32 %v442_v40, %v209_v56  ;;  %v2765_v6 = vadd.f32 %v515_v60, %v2715_v44 }
 0x15f   :  { %3104 = vst [vmem:[#allocation26_spill] sm:$0xff] %v2757_v0  ;;  %3105 = vst [vmem:[#allocation27_spill] sm:$0xff] %v2760_v58 }
 0x160   :  { %3106 = vst [vmem:[#allocation28_spill] sm:$0xff] %v2762_v10  ;;  %3107 = vst [vmem:[#allocation29_spill] sm:$0xff] %v2765_v6 }
 0x162   :  { %v446_v14 = vpop.f32.mrb[12].mxu0  ;;  %v519_v11 = vpop.f32.mrb[12].mxu1 }
 0x163   :  { %v2767_v32 = vadd.f32 %v446_v14, %v205_v45  ;;  %v448_v57 = vpop.f32.mrb[13].mxu0  ;;  %v2770_v22 = vadd.f32 %v519_v11, %v2709_v41  ;;  %v521_v1 = vpop.f32.mrb[13].mxu1 }
 0x164   :  { %v2772_v0 = vadd.f32 %v448_v57, %v209_v56  ;;  %v450_v34 = vpop.f32.mrb[14].mxu0  ;;  %v2775_v36 = vadd.f32 %v521_v1, %v2715_v44  ;;  %v523_v40 = vpop.f32.mrb[14].mxu1  ;;  %v417_v57 = vadd.f32 %v2711_v42, %v205_v45  ;;  %v419_v1 = vadd.f32 %v418_v46, %v209_v56 }
 0x165   :  { %3108 = vst [vmem:[#allocation30_spill] sm:$0xff] %v2767_v32  ;;  %3109 = vst [vmem:[#allocation31_spill] sm:$0xff] %v2770_v22  ;;  %v2777_v10 = vadd.f32 %v450_v34, %v205_v45  ;;  %v452_v60 = vpop.f32.mrb[15].mxu0  ;;  %v2780_v6 = vadd.f32 %v523_v40, %v2709_v41  ;;  %v525_v14 = vpop.f32.mrb[15].mxu1 }
 0x166   :  { %3110 = vst [vmem:[#allocation32_spill] sm:$0xff] %v2772_v0  ;;  %3111 = vst [vmem:[#allocation33_spill] sm:$0xff] %v2775_v36  ;;  %v2782_v32 = vadd.f32 %v452_v60, %v209_v56  ;;  %v2785_v11 = vadd.f32 %v525_v14, %v2715_v44  ;;  %v490_v0 = vadd.f32 %v2713_v43, %v2709_v41 }
 0x167   :  { %3112 = vst [vmem:[#allocation34_spill] sm:$0xff] %v2777_v10  ;;  %3113 = vst [vmem:[#allocation35_spill] sm:$0xff] %v2780_v6  ;;  %v492_v36 = vadd.f32 %v491_v55, %v2715_v44 }
 0x168   :  { %3114 = vst [vmem:[#allocation36_spill] sm:$0xff] %v2782_v32  ;;  %3115 = vst [vmem:[#allocation37_spill] sm:$0xff] %v2785_v11 }
 0x16a   :  { %v793_v34 = vpop.f32.mrb[16].mxu0  ;;  %v834_v10 = vpop.f32.mrb[16].mxu1 }
 0x16b   :  { %v841_v22 = vadd.f32 %v793_v34, %v417_v57  ;;  %v843_v58 = vadd.f32 %v834_v10, %v490_v0  ;;  %v795_v40 = vpop.f32.mrb[17].mxu0  ;;  %v836_v6 = vpop.f32.mrb[17].mxu1 }
 0x16c   :  { %v842_v37 = vadd.f32 %v795_v40, %v419_v1  ;;  %v844_v60 = vadd.f32 %v836_v6, %v492_v36  ;;  %v797_v32 = vpop.f32.mrb[18].mxu0  ;;  %v838_v35 = vpop.f32.mrb[18].mxu1 }
 0x16d   :  { %v1898_v14 = vmul.f32 -1.442695, %v841_v22  ;;  %v798_v11 = vpop.f32.mrb[19].mxu0  ;;  %v839_v33 = vpop.f32.mrb[19].mxu1  ;;  %v1900_v41 = vmul.f32 -1.442695, %v843_v58 }
 0x16e   :  { %v1899_v42 = vmul.f32 -1.442695, %v842_v37  ;;  %v3116_v11 = vmov 0  }
 0x16f   :  { %2108 = vpow2.f32 %v1898_v14 }
 0x170   :  { %2110 = vpow2.f32 %v1899_v42 }
 0x171   :  { %2112 = vtanh.f32 %v844_v60 }
 0x172   :  { %2114 = vpow2.f32 %v1900_v41 }
 0x179   :  { %v2109_v43 = vpop.eup %2108 }
 0x17a   :  { %v854_v45 = vadd.f32 1.0, %v2109_v43  ;;  %v2111_v44 = vpop.eup %2110 }
 0x17b   :  { %v855_v0 = vadd.f32 1.0, %v2111_v44  ;;  %v2113_v46 = vpop.eup %2112 }
 0x17c   :  { %2116 = vrcp.f32 %v854_v45  ;;  %v2115_v55 = vpop.eup %2114 }
 0x17d   :  { %2118 = vrcp.f32 %v855_v0  ;;  %v856_v32 = vadd.f32 1.0, %v2115_v55 }
 0x17f   :  { %2120 = vrcp.f32 %v856_v32 }
 0x186   :  { %v2117_v56 = vpop.eup %2116 }
 0x187   :  { %v865_v10 = vmul.f32 %v2117_v56, %v2113_v46  ;;  %v2119_v35 = vpop.eup %2118 }
 0x188   :  { %v864_v6 = vmul.f32 0.0, %v2119_v35 }
 0x189   :  { %v2121_v37 = vpop.eup %2120 }
 0x18a   :  { %v2791_v33 = vadd.f32 %v865_v10, %v864_v6 }
 0x18c   :  { %2122 = vtanh.f32 %v2791_v33 }
 0x196   :  { %v2123_v58 = vpop.eup %2122 }
 0x197   :  { %v868_v22 = vmul.f32 %v2123_v58, %v2121_v37 }
 0x199   :  { %v876_v36 = vpack.c.bf16 %v868_v22, %v868_v22 }
 0x19b   :  { %910 = vmatmul.mubr.bf16.vlgmr.msra.gmra.mrb[20].mxu0 %v876_v36  ;;  %951 = vmatmul.mubr.bf16.vlgmr.msra.gmra.mrb[20].mxu1 %v876_v36 }
 0x19c   :  { %996 = vmatpush1.bf16.msra.mxu0 %v2556_v47  ;;  %1037 = vmatpush1.bf16.msra.mxu1 %v2560_v48 }
 0x19d   :  { %997 = vmatprep.subr.bf16.mxu0 %v2562_v49  ;;  %1038 = vmatprep.subr.bf16.mxu1 %v2566_v50 }
 0x19e   :  { %1027 = vmatprep.mubr.bf16.mxu0 %v3116_v11  ;;  %1068 = vmatprep.mubr.bf16.mxu1 %v3116_v11 }
 0x1a0   :  { %998 = vmatpush1.bf16.msra.mxu0 %v2570_v51  ;;  %1039 = vmatpush1.bf16.msra.mxu1 %v2572_v52 }
 0x1a1   :  { %999 = vmatprep.subr.bf16.mxu0 %v2574_v53  ;;  %1040 = vmatprep.subr.bf16.mxu1 %v2576_v54 }
 0x1a4   :  { %1000 = vmatpush1.bf16.msra.mxu0 %v2588_v62  ;;  %1041 = vmatpush1.bf16.msra.mxu1 %v2590_v63 }
 0x1a5   :  { %1001 = vmatprep.subr.bf16.mxu0 %v2594_v2  ;;  %1042 = vmatprep.subr.bf16.mxu1 %v2598_v3 }
 0x1a8   :  { %1002 = vmatpush1.bf16.msra.mxu0 %v2600_v4  ;;  %1043 = vmatpush1.bf16.msra.mxu1 %v2602_v5 }
 0x1a9   :  { %1003 = vmatprep.subr.bf16.mxu0 %v2605_v8  ;;  %1044 = vmatprep.subr.bf16.mxu1 %v2614_v13 }
 0x1ac   :  { %1004 = vmatpush1.bf16.msra.mxu0 %v2618_v15  ;;  %1045 = vmatpush1.bf16.msra.mxu1 %v2622_v16 }
 0x1ad   :  { %1005 = vmatprep.subr.bf16.mxu0 %v2626_v17  ;;  %1046 = vmatprep.subr.bf16.mxu1 %v2628_v18 }
 0x1b0   :  { %1006 = vmatpush1.bf16.msra.mxu0 %v2630_v19  ;;  %1047 = vmatpush1.bf16.msra.mxu1 %v2634_v20 }
 0x1b1   :  { %1007 = vmatprep.subr.bf16.mxu0 %v2638_v23  ;;  %1048 = vmatprep.subr.bf16.mxu1 %v2640_v24 }
 0x1b4   :  { %1008 = vmatpush1.bf16.msra.mxu0 %v2646_v26  ;;  %1049 = vmatpush1.bf16.msra.mxu1 %v2648_v27 }
 0x1b5   :  { %1009 = vmatprep.subr.bf16.mxu0 %v2652_v28  ;;  %1050 = vmatprep.subr.bf16.mxu1 %v2654_v29 }
 0x1b8   :  { %1010 = vmatpush1.bf16.msra.mxu0 %v2658_v30  ;;  %1051 = vmatpush1.bf16.msra.mxu1 %v2660_v31 }
 0x1b9   :  { %1113 = vmatprep.subr.bf16.mxu0 %v2544_v38  ;;  %1154 = vmatprep.subr.bf16.mxu1 %v2546_v39 }
 0x26e   :  { %v911_v57 = vpop.f32.mrb[20].mxu0  ;;  %v952_v1 = vpop.f32.mrb[20].mxu1 }
 0x26f   :  { %v959_v34 = vadd.f32 %v911_v57, %v2717_v59  ;;  %v961_v40 = vadd.f32 %v952_v1, %v2720_v61  ;;  %v913_v60 = vpop.f32.mrb[21].mxu0  ;;  %v954_v14 = vpop.f32.mrb[21].mxu1 }
 0x270   :  { %v960_v42 = vadd.f32 %v913_v60, %v2722_v7  ;;  %v962_v41 = vadd.f32 %v954_v14, %v2725_v9  ;;  %v915_v43 = vpop.f32.mrb[22].mxu0  ;;  %v956_v45 = vpop.f32.mrb[22].mxu1 }
 0x271   :  { %v1901_v44 = vmul.f32 -1.442695, %v959_v34  ;;  %v916_v0 = vpop.f32.mrb[23].mxu0  ;;  %v957_v46 = vpop.f32.mrb[23].mxu1  ;;  %v1903_v56 = vmul.f32 -1.442695, %v961_v40 }
 0x272   :  { %v1902_v55 = vmul.f32 -1.442695, %v960_v42 }
 0x273   :  { %2124 = vpow2.f32 %v1901_v44  ;;  %v3117_v44 = vld [vmem:[#allocation17_spill] sm:$0xff] }
 0x274   :  { %2126 = vpow2.f32 %v1902_v55 }
 0x275   :  { %2128 = vtanh.f32 %v962_v41 }
 0x276   :  { %2130 = vpow2.f32 %v1903_v56 }
 0x27d   :  { %v2125_v10 = vpop.eup %2124 }
 0x27e   :  { %v972_v35 = vadd.f32 1.0, %v2125_v10  ;;  %v2127_v59 = vpop.eup %2126 }
 0x27f   :  { %v973_v61 = vadd.f32 1.0, %v2127_v59  ;;  %v2129_v7 = vpop.eup %2128 }
 0x280   :  { %2132 = vrcp.f32 %v972_v35  ;;  %v2131_v32 = vpop.eup %2130 }
 0x281   :  { %2134 = vrcp.f32 %v973_v61  ;;  %v974_v58 = vadd.f32 1.0, %v2131_v32 }
 0x283   :  { %2136 = vrcp.f32 %v974_v58 }
 0x28a   :  { %v2133_v9 = vpop.eup %2132 }
 0x28b   :  { %v983_v6 = vmul.f32 %v2133_v9, %v2129_v7  ;;  %v2135_v37 = vpop.eup %2134 }
 0x28c   :  { %v982_v22 = vmul.f32 %v2135_v37, %v2791_v33 }
 0x28d   :  { %v2137_v57 = vpop.eup %2136 }
 0x28e   :  { %v2833_v36 = vadd.f32 %v983_v6, %v982_v22 }
 0x290   :  { %2138 = vtanh.f32 %v2833_v36 }
 0x29a   :  { %v2139_v1 = vpop.eup %2138 }
 0x29b   :  { %v986_v34 = vmul.f32 %v2139_v1, %v2137_v57 }
 0x29d   :  { %v994_v40 = vpack.c.bf16 %v986_v34, %v986_v34 }
 0x29f   :  { %1028 = vmatmul.mubr.bf16.vlgmr.msra.gmra.mrb[24].mxu0 %v994_v40  ;;  %1069 = vmatmul.mubr.bf16.vlgmr.msra.gmra.mrb[24].mxu1 %v994_v40 }
 0x2a0   :  { %1114 = vmatpush1.bf16.msra.mxu0 %v2556_v47  ;;  %1155 = vmatpush1.bf16.msra.mxu1 %v2560_v48 }
 0x2a1   :  { %1115 = vmatprep.subr.bf16.mxu0 %v2562_v49  ;;  %1156 = vmatprep.subr.bf16.mxu1 %v2566_v50 }
 0x2a2   :  { %1145 = vmatprep.mubr.bf16.mxu0 %v3116_v11  ;;  %1186 = vmatprep.mubr.bf16.mxu1 %v3116_v11 }
 0x2a4   :  { %1116 = vmatpush1.bf16.msra.mxu0 %v2570_v51  ;;  %1157 = vmatpush1.bf16.msra.mxu1 %v2572_v52 }
 0x2a5   :  { %1117 = vmatprep.subr.bf16.mxu0 %v2574_v53  ;;  %1158 = vmatprep.subr.bf16.mxu1 %v2576_v54 }
 0x2a8   :  { %1118 = vmatpush1.bf16.msra.mxu0 %v2588_v62  ;;  %1159 = vmatpush1.bf16.msra.mxu1 %v2590_v63 }
 0x2a9   :  { %1119 = vmatprep.subr.bf16.mxu0 %v2594_v2  ;;  %1160 = vmatprep.subr.bf16.mxu1 %v2598_v3 }
 0x2ac   :  { %1120 = vmatpush1.bf16.msra.mxu0 %v2600_v4  ;;  %1161 = vmatpush1.bf16.msra.mxu1 %v2602_v5 }
 0x2ad   :  { %1121 = vmatprep.subr.bf16.mxu0 %v2605_v8  ;;  %1162 = vmatprep.subr.bf16.mxu1 %v2614_v13 }
 0x2b0   :  { %1122 = vmatpush1.bf16.msra.mxu0 %v2618_v15  ;;  %1163 = vmatpush1.bf16.msra.mxu1 %v2622_v16 }
 0x2b1   :  { %1123 = vmatprep.subr.bf16.mxu0 %v2626_v17  ;;  %1164 = vmatprep.subr.bf16.mxu1 %v2628_v18 }
 0x2b4   :  { %1124 = vmatpush1.bf16.msra.mxu0 %v2630_v19  ;;  %1165 = vmatpush1.bf16.msra.mxu1 %v2634_v20 }
 0x2b5   :  { %1125 = vmatprep.subr.bf16.mxu0 %v2638_v23  ;;  %1166 = vmatprep.subr.bf16.mxu1 %v2640_v24 }
 0x2b8   :  { %1126 = vmatpush1.bf16.msra.mxu0 %v2646_v26  ;;  %1167 = vmatpush1.bf16.msra.mxu1 %v2648_v27 }
 0x2b9   :  { %1127 = vmatprep.subr.bf16.mxu0 %v2652_v28  ;;  %1168 = vmatprep.subr.bf16.mxu1 %v2654_v29 }
 0x2bc   :  { %1128 = vmatpush1.bf16.msra.mxu0 %v2658_v30  ;;  %1169 = vmatpush1.bf16.msra.mxu1 %v2660_v31 }
 0x2bd   :  { %1231 = vmatprep.subr.bf16.mxu0 %v2544_v38  ;;  %1272 = vmatprep.subr.bf16.mxu1 %v2546_v39 }
 0x372   :  { %v1029_v33 = vpop.f32.mrb[24].mxu0  ;;  %v1070_v60 = vpop.f32.mrb[24].mxu1 }
 0x373   :  { %v1077_v14 = vadd.f32 %v1029_v33, %v2727_v12  ;;  %v1079_v42 = vadd.f32 %v1070_v60, %v2730_v21  ;;  %v1031_v41 = vpop.f32.mrb[25].mxu0  ;;  %v1072_v43 = vpop.f32.mrb[25].mxu1 }
 0x374   :  { %v1078_v45 = vadd.f32 %v1031_v41, %v2732_v25  ;;  %v1080_v0 = vadd.f32 %v1072_v43, %v3117_v44  ;;  %v1033_v46 = vpop.f32.mrb[26].mxu0  ;;  %v1074_v55 = vpop.f32.mrb[26].mxu1  ;;  %v3119_v41 = vld [vmem:[#allocation19_spill] sm:$0xff] }
 0x375   :  { %v1904_v56 = vmul.f32 -1.442695, %v1077_v14  ;;  %v1034_v10 = vpop.f32.mrb[27].mxu0  ;;  %v1075_v35 = vpop.f32.mrb[27].mxu1  ;;  %v1906_v61 = vmul.f32 -1.442695, %v1079_v42 }
 0x376   :  { %v1905_v59 = vmul.f32 -1.442695, %v1078_v45  ;;  %v3118_v14 = vld [vmem:[#allocation18_spill] sm:$0xff]  ;;  %v3121_v55 = vld [vmem:[#allocation21_spill] sm:$0xff] }
 0x377   :  { %2140 = vpow2.f32 %v1904_v56 }
 0x378   :  { %2142 = vpow2.f32 %v1905_v59 }
 0x379   :  { %2144 = vtanh.f32 %v1080_v0  ;;  %v3120_v0 = vld [vmem:[#allocation20_spill] sm:$0xff] }
 0x37a   :  { %2146 = vpow2.f32 %v1906_v61 }
 0x381   :  { %v2141_v7 = vpop.eup %2140 }
 0x382   :  { %v1090_v32 = vadd.f32 1.0, %v2141_v7  ;;  %v2143_v12 = vpop.eup %2142 }
 0x383   :  { %v1091_v21 = vadd.f32 1.0, %v2143_v12  ;;  %v2145_v25 = vpop.eup %2144 }
 0x384   :  { %2148 = vrcp.f32 %v1090_v32  ;;  %v2147_v9 = vpop.eup %2146 }
 0x385   :  { %2150 = vrcp.f32 %v1091_v21  ;;  %v1092_v22 = vadd.f32 1.0, %v2147_v9 }
 0x387   :  { %2152 = vrcp.f32 %v1092_v22 }
 0x38e   :  { %v2149_v6 = vpop.eup %2148 }
 0x38f   :  { %v1101_v37 = vmul.f32 %v2149_v6, %v2145_v25  ;;  %v2151_v58 = vpop.eup %2150 }
 0x390   :  { %v1100_v57 = vmul.f32 %v2151_v58, %v2833_v36 }
 0x391   :  { %v2153_v34 = vpop.eup %2152 }
 0x392   :  { %v2875_v1 = vadd.f32 %v1101_v37, %v1100_v57 }
 0x394   :  { %2154 = vtanh.f32 %v2875_v1 }
 0x39e   :  { %v2155_v40 = vpop.eup %2154 }
 0x39f   :  { %v1104_v33 = vmul.f32 %v2155_v40, %v2153_v34 }
 0x3a1   :  { %v1112_v60 = vpack.c.bf16 %v1104_v33, %v1104_v33 }
 0x3a3   :  { %1146 = vmatmul.mubr.bf16.vlgmr.msra.gmra.mrb[28].mxu0 %v1112_v60  ;;  %1187 = vmatmul.mubr.bf16.vlgmr.msra.gmra.mrb[28].mxu1 %v1112_v60 }
 0x3a4   :  { %1232 = vmatpush1.bf16.msra.mxu0 %v2556_v47  ;;  %1273 = vmatpush1.bf16.msra.mxu1 %v2560_v48 }
 0x3a5   :  { %1233 = vmatprep.subr.bf16.mxu0 %v2562_v49  ;;  %1274 = vmatprep.subr.bf16.mxu1 %v2566_v50 }
 0x3a6   :  { %1263 = vmatprep.mubr.bf16.mxu0 %v3116_v11  ;;  %1304 = vmatprep.mubr.bf16.mxu1 %v3116_v11 }
 0x3a8   :  { %1234 = vmatpush1.bf16.msra.mxu0 %v2570_v51  ;;  %1275 = vmatpush1.bf16.msra.mxu1 %v2572_v52 }
 0x3a9   :  { %1235 = vmatprep.subr.bf16.mxu0 %v2574_v53  ;;  %1276 = vmatprep.subr.bf16.mxu1 %v2576_v54 }
 0x3ac   :  { %1236 = vmatpush1.bf16.msra.mxu0 %v2588_v62  ;;  %1277 = vmatpush1.bf16.msra.mxu1 %v2590_v63 }
 0x3ad   :  { %1237 = vmatprep.subr.bf16.mxu0 %v2594_v2  ;;  %1278 = vmatprep.subr.bf16.mxu1 %v2598_v3 }
 0x3b0   :  { %1238 = vmatpush1.bf16.msra.mxu0 %v2600_v4  ;;  %1279 = vmatpush1.bf16.msra.mxu1 %v2602_v5 }
 0x3b1   :  { %1239 = vmatprep.subr.bf16.mxu0 %v2605_v8  ;;  %1280 = vmatprep.subr.bf16.mxu1 %v2614_v13 }
 0x3b4   :  { %1240 = vmatpush1.bf16.msra.mxu0 %v2618_v15  ;;  %1281 = vmatpush1.bf16.msra.mxu1 %v2622_v16 }
 0x3b5   :  { %1241 = vmatprep.subr.bf16.mxu0 %v2626_v17  ;;  %1282 = vmatprep.subr.bf16.mxu1 %v2628_v18 }
 0x3b8   :  { %1242 = vmatpush1.bf16.msra.mxu0 %v2630_v19  ;;  %1283 = vmatpush1.bf16.msra.mxu1 %v2634_v20 }
 0x3b9   :  { %1243 = vmatprep.subr.bf16.mxu0 %v2638_v23  ;;  %1284 = vmatprep.subr.bf16.mxu1 %v2640_v24 }
 0x3bc   :  { %1244 = vmatpush1.bf16.msra.mxu0 %v2646_v26  ;;  %1285 = vmatpush1.bf16.msra.mxu1 %v2648_v27 }
 0x3bd   :  { %1245 = vmatprep.subr.bf16.mxu0 %v2652_v28  ;;  %1286 = vmatprep.subr.bf16.mxu1 %v2654_v29 }
 0x3c0   :  { %1246 = vmatpush1.bf16.msra.mxu0 %v2658_v30  ;;  %1287 = vmatpush1.bf16.msra.mxu1 %v2660_v31 }
 0x3c1   :  { %1349 = vmatprep.subr.bf16.mxu0 %v2544_v38  ;;  %1390 = vmatprep.subr.bf16.mxu1 %v2546_v39 }
 0x476   :  { %v1147_v47 = vpop.f32.mrb[28].mxu0  ;;  %v1188_v36 = vpop.f32.mrb[28].mxu1 }
 0x477   :  { %v1195_v42 = vadd.f32 %v1147_v47, %v3118_v14  ;;  %v1197_v43 = vadd.f32 %v1188_v36, %v3119_v41  ;;  %v1149_v45 = vpop.f32.mrb[29].mxu0  ;;  %v1190_v44 = vpop.f32.mrb[29].mxu1  ;;  %v2920_v14 = vld [vmem:[#allocation10] ss:$16 sps:$4 sm:$0xff]  }
 0x478   :  { %v1196_v46 = vadd.f32 %v1149_v45, %v3120_v0  ;;  %v1198_v56 = vadd.f32 %v1190_v44, %v3121_v55  ;;  %v1151_v10 = vpop.f32.mrb[30].mxu0  ;;  %v1192_v35 = vpop.f32.mrb[30].mxu1 }
 0x479   :  { %v1907_v59 = vmul.f32 -1.442695, %v1195_v42  ;;  %v1152_v61 = vpop.f32.mrb[31].mxu0  ;;  %v1193_v7 = vpop.f32.mrb[31].mxu1  ;;  %v1909_v39 = vmul.f32 -1.442695, %v1197_v43 }
 0x47a   :  { %v1908_v38 = vmul.f32 -1.442695, %v1196_v46 }
 0x47b   :  { %2156 = vpow2.f32 %v1907_v59 }
 0x47c   :  { %2158 = vpow2.f32 %v1908_v38 }
 0x47d   :  { %2160 = vtanh.f32 %v1198_v56 }
 0x47e   :  { %2162 = vpow2.f32 %v1909_v39 }
 0x485   :  { %v2157_v32 = vpop.eup %2156 }
 0x486   :  { %v1208_v12 = vadd.f32 1.0, %v2157_v32  ;;  %v2159_v21 = vpop.eup %2158 }
 0x487   :  { %v1209_v25 = vadd.f32 1.0, %v2159_v21  ;;  %v2161_v9 = vpop.eup %2160 }
 0x488   :  { %2164 = vrcp.f32 %v1208_v12  ;;  %v2163_v6 = vpop.eup %2162 }
 0x489   :  { %2166 = vrcp.f32 %v1209_v25  ;;  %v1210_v57 = vadd.f32 1.0, %v2163_v6  ;;  %v2969_v25 = vld [vmem:[#allocation10 + $0x8] ss:$16 sps:$4 sm:$0xff]   ;;  %v2975_v6 = vld [vmem:[#allocation10 + $0x2c] ss:$16 sps:$4 sm:$0xff]  }
 0x48b   :  { %2168 = vrcp.f32 %v1210_v57  ;;  %v2989_v57 = vld [vmem:[#allocation10 + $0x4c] ss:$16 sps:$4 sm:$0xff]  }
 0x492   :  { %v2165_v37 = vpop.eup %2164 }
 0x493   :  { %v1219_v58 = vmul.f32 %v2165_v37, %v2161_v9  ;;  %v2167_v22 = vpop.eup %2166  ;;  %v2972_v9 = vld [vmem:[#allocation10 + $0x24] ss:$16 sps:$4 sm:$0xff]   ;;  %v2980_v37 = vld [vmem:[#allocation10 + $0x20] ss:$16 sps:$4 sm:$0xff]  }
 0x494   :  { %v1218_v34 = vmul.f32 %v2167_v22, %v2875_v1  ;;  %v2986_v22 = vld [vmem:[#allocation10 + $0x44] ss:$16 sps:$4 sm:$0xff]  }
 0x495   :  { %v2169_v33 = vpop.eup %2168 }
 0x496   :  { %v2917_v40 = vadd.f32 %v1219_v58, %v1218_v34  ;;  %v2983_v58 = vld [vmem:[#allocation10 + $0x28] ss:$16 sps:$4 sm:$0xff]   ;;  %v2992_v34 = vld [vmem:[#allocation10 + $0x40] ss:$16 sps:$4 sm:$0xff]  }
 0x498   :  { %2170 = vtanh.f32 %v2917_v40 }
 0x4a2   :  { %v2171_v60 = vpop.eup %2170 }
 0x4a3   :  { %v1222_v47 = vmul.f32 %v2171_v60, %v2169_v33  ;;  %v2998_v33 = vld [vmem:[#allocation10 + $0x64] ss:$16 sps:$4 sm:$0xff]   ;;  %v3001_v60 = vld [vmem:[#allocation10 + $0x6c] ss:$16 sps:$4 sm:$0xff]  }
 0x4a5   :  { %v1230_v36 = vpack.c.bf16 %v1222_v47, %v1222_v47  ;;  %v3004_v47 = vld [vmem:[#allocation10 + $0x60] ss:$16 sps:$4 sm:$0xff]  }
 0x4a7   :  { %1264 = vmatmul.mubr.bf16.vlgmr.msra.gmra.mrb[32].mxu0 %v1230_v36  ;;  %1305 = vmatmul.mubr.bf16.vlgmr.msra.gmra.mrb[32].mxu1 %v1230_v36  ;;  %v3007_v36 = vld [vmem:[#allocation10 + $0x68] ss:$16 sps:$4 sm:$0xff]  }
 0x4a8   :  { %1350 = vmatpush1.bf16.msra.mxu0 %v2920_v14  ;;  %1391 = vmatpush1.bf16.msra.mxu1 %v2560_v48  ;;  %v2954_v48 = vld [vmem:[#allocation10 + $0x4] ss:$16 sps:$4 sm:$0xff]  }
 0x4a9   :  { %1351 = vmatprep.subr.bf16.mxu0 %v2562_v49  ;;  %1392 = vmatprep.subr.bf16.mxu1 %v2566_v50  ;;  %v2957_v49 = vld [vmem:[#allocation10 + $0xc] ss:$16 sps:$4 sm:$0xff]  }
 0x4aa   :  { %1381 = vmatprep.mubr.bf16.mxu0 %v3116_v11  ;;  %1422 = vmatprep.mubr.bf16.mxu1 %v3116_v11 }
 0x4ac   :  { %1352 = vmatpush1.bf16.msra.mxu0 %v2570_v51  ;;  %1393 = vmatpush1.bf16.msra.mxu1 %v2572_v52  ;;  %v3122_v52 = vld [vmem:[#allocation22_spill] sm:$0xff] }
 0x4ad   :  { %1353 = vmatprep.subr.bf16.mxu0 %v2574_v53  ;;  %1394 = vmatprep.subr.bf16.mxu1 %v2576_v54  ;;  %v3123_v54 = vld [vmem:[#allocation23_spill] sm:$0xff] }
 0x4b0   :  { %1354 = vmatpush1.bf16.msra.mxu0 %v2588_v62  ;;  %1395 = vmatpush1.bf16.msra.mxu1 %v2590_v63 }
 0x4b1   :  { %1355 = vmatprep.subr.bf16.mxu0 %v2594_v2  ;;  %1396 = vmatprep.subr.bf16.mxu1 %v2598_v3  ;;  %v3124_v3 = vld [vmem:[#allocation24_spill] sm:$0xff] }
 0x4b4   :  { %1356 = vmatpush1.bf16.msra.mxu0 %v2600_v4  ;;  %1397 = vmatpush1.bf16.msra.mxu1 %v2602_v5  ;;  %v3125_v5 = vld [vmem:[#allocation25_spill] sm:$0xff] }
 0x4b5   :  { %1357 = vmatprep.subr.bf16.mxu0 %v2605_v8  ;;  %1398 = vmatprep.subr.bf16.mxu1 %v2614_v13 }
 0x4b8   :  { %1358 = vmatpush1.bf16.msra.mxu0 %v2618_v15  ;;  %1399 = vmatpush1.bf16.msra.mxu1 %v2622_v16 }
 0x4b9   :  { %1359 = vmatprep.subr.bf16.mxu0 %v2626_v17  ;;  %1400 = vmatprep.subr.bf16.mxu1 %v2628_v18 }
 0x4bc   :  { %1360 = vmatpush1.bf16.msra.mxu0 %v2630_v19  ;;  %1401 = vmatpush1.bf16.msra.mxu1 %v2634_v20 }
 0x4bd   :  { %1361 = vmatprep.subr.bf16.mxu0 %v2638_v23  ;;  %1402 = vmatprep.subr.bf16.mxu1 %v2640_v24 }
 0x4c0   :  { %1362 = vmatpush1.bf16.msra.mxu0 %v2646_v26  ;;  %1403 = vmatpush1.bf16.msra.mxu1 %v2648_v27 }
 0x4c1   :  { %1363 = vmatprep.subr.bf16.mxu0 %v2652_v28  ;;  %1404 = vmatprep.subr.bf16.mxu1 %v2654_v29 }
 0x4c4   :  { %1364 = vmatpush1.bf16.msra.mxu0 %v2658_v30  ;;  %1405 = vmatpush1.bf16.msra.mxu1 %v2660_v31 }
 0x4c5   :  { %1467 = vmatprep.subr.bf16.mxu0 %v2954_v48  ;;  %1508 = vmatprep.subr.bf16.mxu1 %v2957_v49 }
 0x57a   :  { %v1265_v50 = vpop.f32.mrb[32].mxu0  ;;  %v1306_v51 = vpop.f32.mrb[32].mxu1 }
 0x57b   :  { %v1313_v53 = vadd.f32 %v1265_v50, %v3122_v52  ;;  %v1315_v62 = vadd.f32 %v1306_v51, %v3123_v54  ;;  %v1267_v63 = vpop.f32.mrb[33].mxu0  ;;  %v1308_v2 = vpop.f32.mrb[33].mxu1  ;;  %v3010_v50 = vld [vmem:[#allocation10 + $0x84] ss:$16 sps:$4 sm:$0xff]   ;;  %v3013_v51 = vld [vmem:[#allocation10 + $0x8c] ss:$16 sps:$4 sm:$0xff]  }
 0x57c   :  { %v1314_v4 = vadd.f32 %v1267_v63, %v3124_v3  ;;  %v1316_v8 = vadd.f32 %v1308_v2, %v3125_v5  ;;  %v1269_v13 = vpop.f32.mrb[34].mxu0  ;;  %v1310_v15 = vpop.f32.mrb[34].mxu1  ;;  %v3016_v52 = vld [vmem:[#allocation10 + $0x80] ss:$16 sps:$4 sm:$0xff]   ;;  %v3128_v54 = vld [vmem:[#allocation28_spill] sm:$0xff] }
 0x57d   :  { %v1910_v16 = vmul.f32 -1.442695, %v1313_v53  ;;  %v1270_v1 = vpop.f32.mrb[35].mxu0  ;;  %v1311_v42 = vpop.f32.mrb[35].mxu1  ;;  %v1912_v43 = vmul.f32 -1.442695, %v1315_v62 }
 0x57e   :  { %v1911_v41 = vmul.f32 -1.442695, %v1314_v4  ;;  %v3019_v53 = vld [vmem:[#allocation10 + $0x88] ss:$16 sps:$4 sm:$0xff]   ;;  %v3129_v62 = vld [vmem:[#allocation29_spill] sm:$0xff] }
 0x57f   :  { %2172 = vpow2.f32 %v1910_v16 }
 0x580   :  { %2174 = vpow2.f32 %v1911_v41 }
 0x581   :  { %2176 = vtanh.f32 %v1316_v8 }
 0x582   :  { %2178 = vpow2.f32 %v1912_v43 }
 0x589   :  { %v2173_v45 = vpop.eup %2172 }
 0x58a   :  { %v1326_v44 = vadd.f32 1.0, %v2173_v45  ;;  %v2175_v0 = vpop.eup %2174 }
 0x58b   :  { %v1327_v46 = vadd.f32 1.0, %v2175_v0  ;;  %v2177_v55 = vpop.eup %2176 }
 0x58c   :  { %2180 = vrcp.f32 %v1326_v44  ;;  %v2179_v56 = vpop.eup %2178 }
 0x58d   :  { %2182 = vrcp.f32 %v1327_v46  ;;  %v1328_v61 = vadd.f32 1.0, %v2179_v56 }
 0x58f   :  { %2184 = vrcp.f32 %v1328_v61  ;;  %v2261_v61 = vld [vmem:[#allocation10 + $0xcc] ss:$16 sps:$4 sm:$0xff]  }
 0x596   :  { %v2181_v10 = vpop.eup %2180 }
 0x597   :  { %v1337_v35 = vmul.f32 %v2181_v10, %v2177_v55  ;;  %v2183_v59 = vpop.eup %2182  ;;  %v2258_v10 = vld [vmem:[#allocation10 + $0xa0] ss:$16 sps:$4 sm:$0xff]  }
 0x598   :  { %v1336_v7 = vmul.f32 %v2183_v59, %v2917_v40  ;;  %v2995_v40 = vld [vmem:[#allocation10 + $0x48] ss:$16 sps:$4 sm:$0xff]   ;;  %v2260_v59 = vld [vmem:[#allocation10 + $0xc4] ss:$16 sps:$4 sm:$0xff]  }
 0x599   :  { %v2185_v39 = vpop.eup %2184 }
 0x59a   :  { %v2965_v38 = vadd.f32 %v1337_v35, %v1336_v7  ;;  %v2259_v35 = vld [vmem:[#allocation10 + $0xa8] ss:$16 sps:$4 sm:$0xff]   ;;  %v2262_v7 = vld [vmem:[#allocation10 + $0xc0] ss:$16 sps:$4 sm:$0xff]  }
 0x59c   :  { %2186 = vtanh.f32 %v2965_v38 }
 0x5a6   :  { %v2187_v32 = vpop.eup %2186 }
 0x5a7   :  { %v1340_v12 = vmul.f32 %v2187_v32, %v2185_v39  ;;  %v2264_v39 = vld [vmem:[#allocation10 + $0xe4] ss:$16 sps:$4 sm:$0xff]   ;;  %v2265_v32 = vld [vmem:[#allocation10 + $0xec] ss:$16 sps:$4 sm:$0xff]  }
 0x5a9   :  { %v1348_v21 = vpack.c.bf16 %v1340_v12, %v1340_v12  ;;  %v2266_v12 = vld [vmem:[#allocation10 + $0xe0] ss:$16 sps:$4 sm:$0xff]  }
 0x5ab   :  { %1382 = vmatmul.mubr.bf16.vlgmr.msra.gmra.mrb[36].mxu0 %v1348_v21  ;;  %1423 = vmatmul.mubr.bf16.vlgmr.msra.gmra.mrb[36].mxu1 %v1348_v21  ;;  %v2267_v21 = vld [vmem:[#allocation10 + $0xe8] ss:$16 sps:$4 sm:$0xff]  }
 0x5ac   :  { %1468 = vmatpush1.bf16.msra.mxu0 %v2920_v14  ;;  %1509 = vmatpush1.bf16.msra.mxu1 %v2969_v25 }
 0x5ad   :  { %1469 = vmatprep.subr.bf16.mxu0 %v2972_v9  ;;  %1510 = vmatprep.subr.bf16.mxu1 %v2975_v6 }
 0x5ae   :  { %1499 = vmatprep.mubr.bf16.mxu0 %v3116_v11  ;;  %1540 = vmatprep.mubr.bf16.mxu1 %v3116_v11 }
 0x5b0   :  { %1470 = vmatpush1.bf16.msra.mxu0 %v2980_v37  ;;  %1511 = vmatpush1.bf16.msra.mxu1 %v2983_v58 }
 0x5b1   :  { %1471 = vmatprep.subr.bf16.mxu0 %v2986_v22  ;;  %1512 = vmatprep.subr.bf16.mxu1 %v2989_v57 }
 0x5b4   :  { %1472 = vmatpush1.bf16.msra.mxu0 %v2992_v34  ;;  %1513 = vmatpush1.bf16.msra.mxu1 %v2995_v40 }
 0x5b5   :  { %1473 = vmatprep.subr.bf16.mxu0 %v2998_v33  ;;  %1514 = vmatprep.subr.bf16.mxu1 %v3001_v60 }
 0x5b8   :  { %1474 = vmatpush1.bf16.msra.mxu0 %v3004_v47  ;;  %1515 = vmatpush1.bf16.msra.mxu1 %v3007_v36 }
 0x5b9   :  { %1475 = vmatprep.subr.bf16.mxu0 %v3010_v50  ;;  %1516 = vmatprep.subr.bf16.mxu1 %v3013_v51 }
 0x5bc   :  { %1476 = vmatpush1.bf16.msra.mxu0 %v3016_v52  ;;  %1517 = vmatpush1.bf16.msra.mxu1 %v3019_v53 }
 0x5bd   :  { %1477 = vmatprep.subr.bf16.mxu0 %v2626_v17  ;;  %1518 = vmatprep.subr.bf16.mxu1 %v2628_v18 }
 0x5c0   :  { %1478 = vmatpush1.bf16.msra.mxu0 %v2630_v19  ;;  %1519 = vmatpush1.bf16.msra.mxu1 %v2634_v20  ;;  %v3126_v19 = vld [vmem:[#allocation26_spill] sm:$0xff] }
 0x5c1   :  { %1479 = vmatprep.subr.bf16.mxu0 %v2638_v23  ;;  %1520 = vmatprep.subr.bf16.mxu1 %v2640_v24  ;;  %v3127_v23 = vld [vmem:[#allocation27_spill] sm:$0xff] }
 0x5c4   :  { %1480 = vmatpush1.bf16.msra.mxu0 %v2646_v26  ;;  %1521 = vmatpush1.bf16.msra.mxu1 %v2648_v27 }
 0x5c5   :  { %1481 = vmatprep.subr.bf16.mxu0 %v2652_v28  ;;  %1522 = vmatprep.subr.bf16.mxu1 %v2654_v29 }
 0x5c8   :  { %1482 = vmatpush1.bf16.msra.mxu0 %v2658_v30  ;;  %1523 = vmatpush1.bf16.msra.mxu1 %v2660_v31 }
 0x5c9   :  { %1585 = vmatprep.subr.bf16.mxu0 %v2954_v48  ;;  %1626 = vmatprep.subr.bf16.mxu1 %v2957_v49 }
 0x67e   :  { %v1383_v17 = vpop.f32.mrb[36].mxu0  ;;  %v1424_v18 = vpop.f32.mrb[36].mxu1 }
 0x67f   :  { %v1431_v20 = vadd.f32 %v1383_v17, %v3126_v19  ;;  %v1433_v24 = vadd.f32 %v1424_v18, %v3127_v23  ;;  %v1385_v26 = vpop.f32.mrb[37].mxu0  ;;  %v1426_v27 = vpop.f32.mrb[37].mxu1 }
 0x680   :  { %v1432_v28 = vadd.f32 %v1385_v26, %v3128_v54  ;;  %v1434_v29 = vadd.f32 %v1426_v27, %v3129_v62  ;;  %v1387_v63 = vpop.f32.mrb[38].mxu0  ;;  %v1428_v30 = vpop.f32.mrb[38].mxu1 }
 0x681   :  { %v1913_v2 = vmul.f32 -1.442695, %v1431_v20  ;;  %v1388_v31 = vpop.f32.mrb[39].mxu0  ;;  %v1429_v3 = vpop.f32.mrb[39].mxu1  ;;  %v1915_v49 = vmul.f32 -1.442695, %v1433_v24 }
 0x682   :  { %v1914_v48 = vmul.f32 -1.442695, %v1432_v28 }
 0x683   :  { %2188 = vpow2.f32 %v1913_v2 }
 0x684   :  { %2190 = vpow2.f32 %v1914_v48 }
 0x685   :  { %2192 = vtanh.f32 %v1434_v29 }
 0x686   :  { %2194 = vpow2.f32 %v1915_v49  ;;  %v1695_v49 = vld [vmem:[#allocation11] sm:$0xff] }
 0x68d   :  { %v2189_v4 = vpop.eup %2188 }
 0x68e   :  { %v1444_v5 = vadd.f32 1.0, %v2189_v4  ;;  %v2191_v8 = vpop.eup %2190  ;;  %v1696_v4 = vld [vmem:[#allocation11 + $0x8] sm:$0xff] }
 0x68f   :  { %v1445_v13 = vadd.f32 1.0, %v2191_v8  ;;  %v2193_v15 = vpop.eup %2192  ;;  %v2385_v8 = vmov 0.0|0.0  }
 0x690   :  { %2196 = vrcp.f32 %v1444_v5  ;;  %v2195_v16 = vpop.eup %2194  ;;  %v1976_v5 = vpack.c.bf16 %v1696_v4, %v1695_v49 }
 0x691   :  { %2198 = vrcp.f32 %v1445_v13  ;;  %v1446_v43 = vadd.f32 1.0, %v2195_v16  ;;  %v1697_v13 = vld [vmem:[#allocation11 + $0x10] sm:$0xff] }
 0x693   :  { %2200 = vrcp.f32 %v1446_v43  ;;  %v1701_v43 = vld [vmem:[#allocation11 + $0x30] sm:$0xff] }
 0x69a   :  { %v2197_v1 = vpop.eup %2196 }
 0x69b   :  { %v1455_v42 = vmul.f32 %v2197_v1, %v2193_v15  ;;  %v2199_v41 = vpop.eup %2198  ;;  %v1698_v15 = vld [vmem:[#allocation11 + $0x18] sm:$0xff]  ;;  %v1699_v1 = vld [vmem:[#allocation11 + $0x20] sm:$0xff] }
 0x69c   :  { %v1454_v45 = vmul.f32 %v2199_v41, %v2965_v38  ;;  %v2263_v38 = vld [vmem:[#allocation10 + $0xc8] ss:$16 sps:$4 sm:$0xff]   ;;  %v1979_v16 = vpack.c.bf16 %v1698_v15, %v1697_v13 }
 0x69d   :  { %v2201_v0 = vpop.eup %2200 }
 0x69e   :  { %v3041_v44 = vadd.f32 %v1455_v42, %v1454_v45  ;;  %v1700_v42 = vld [vmem:[#allocation11 + $0x28] sm:$0xff]  ;;  %v1702_v45 = vld [vmem:[#allocation11 + $0x38] sm:$0xff] }
 0x69f   :  { %v1982_v41 = vpack.c.bf16 %v1700_v42, %v1699_v1 }
 0x6a0   :  { %2202 = vtanh.f32 %v3041_v44 }
 0x6aa   :  { %v2203_v46 = vpop.eup %2202 }
 0x6ab   :  { %v1458_v55 = vmul.f32 %v2203_v46, %v2201_v0  ;;  %v1703_v0 = vld [vmem:[#allocation11 + $0x40] sm:$0xff]  ;;  %v1704_v46 = vld [vmem:[#allocation11 + $0x48] sm:$0xff] }
 0x6ad   :  { %v1466_v56 = vpack.c.bf16 %v1458_v55, %v1458_v55  ;;  %v1988_v55 = vpack.c.bf16 %v1704_v46, %v1703_v0 }
 0x6af   :  { %1500 = vmatmul.mubr.bf16.vlgmr.msra.gmra.mrb[40].mxu0 %v1466_v56  ;;  %1541 = vmatmul.mubr.bf16.vlgmr.msra.gmra.mrb[40].mxu1 %v1466_v56  ;;  %v1705_v56 = vld [vmem:[#allocation11 + $0x50] sm:$0xff] }
 0x6b0   :  { %1586 = vmatpush1.bf16.msra.mxu0 %v2920_v14  ;;  %1627 = vmatpush1.bf16.msra.mxu1 %v2969_v25  ;;  %v2257_v14 = vld [vmem:[#allocation10 + $0xac] ss:$16 sps:$4 sm:$0xff]  }
 0x6b1   :  { %1587 = vmatprep.subr.bf16.mxu0 %v2972_v9  ;;  %1628 = vmatprep.subr.bf16.mxu1 %v2975_v6  ;;  %v3130_v6 = vld [vmem:[#allocation30_spill] sm:$0xff] }
 0x6b2   :  { %1617 = vmatprep.mubr.bf16.mxu0 %v3116_v11  ;;  %1658 = vmatprep.mubr.bf16.mxu1 %v3116_v11  ;;  %v2256_v11 = vld [vmem:[#allocation10 + $0xa4] ss:$16 sps:$4 sm:$0xff]  }
 0x6b4   :  { %1588 = vmatpush1.bf16.msra.mxu0 %v2980_v37  ;;  %1629 = vmatpush1.bf16.msra.mxu1 %v2983_v58  ;;  %v3131_v58 = vld [vmem:[#allocation31_spill] sm:$0xff] }
 0x6b5   :  { %1589 = vmatprep.subr.bf16.mxu0 %v2986_v22  ;;  %1630 = vmatprep.subr.bf16.mxu1 %v2989_v57 }
 0x6b8   :  { %1590 = vmatpush1.bf16.msra.mxu0 %v2992_v34  ;;  %1631 = vmatpush1.bf16.msra.mxu1 %v2995_v40  ;;  %v3132_v40 = vld [vmem:[#allocation32_spill] sm:$0xff] }
 0x6b9   :  { %1591 = vmatprep.subr.bf16.mxu0 %v2998_v33  ;;  %1632 = vmatprep.subr.bf16.mxu1 %v3001_v60  ;;  %v3133_v60 = vld [vmem:[#allocation33_spill] sm:$0xff] }
 0x6bc   :  { %1592 = vmatpush1.bf16.msra.mxu0 %v3004_v47  ;;  %1633 = vmatpush1.bf16.msra.mxu1 %v3007_v36 }
 0x6bd   :  { %1593 = vmatprep.subr.bf16.mxu0 %v3010_v50  ;;  %1634 = vmatprep.subr.bf16.mxu1 %v3013_v51 }
 0x6c0   :  { %1594 = vmatpush1.bf16.msra.mxu0 %v3016_v52  ;;  %1635 = vmatpush1.bf16.msra.mxu1 %v3019_v53 }
 0x6c1   :  { %1595 = vmatprep.subr.bf16.mxu0 %v2256_v11  ;;  %1636 = vmatprep.subr.bf16.mxu1 %v2257_v14  ;;  %v1706_v11 = vld [vmem:[#allocation11 + $0x58] sm:$0xff] }
 0x6c2   :  { %v1991_v14 = vpack.c.bf16 %v1706_v11, %v1705_v56 }
 0x6c4   :  { %1596 = vmatpush1.bf16.msra.mxu0 %v2258_v10  ;;  %1637 = vmatpush1.bf16.msra.mxu1 %v2259_v35  ;;  %v1707_v10 = vld [vmem:[#allocation11 + $0x60] sm:$0xff]  ;;  %v1708_v35 = vld [vmem:[#allocation11 + $0x68] sm:$0xff] }
 0x6c5   :  { %1597 = vmatprep.subr.bf16.mxu0 %v2260_v59  ;;  %1638 = vmatprep.subr.bf16.mxu1 %v2261_v61  ;;  %v3134_v59 = vmov 0.0   ;;  %v1994_v61 = vpack.c.bf16 %v1708_v35, %v1707_v10 }
 0x6c8   :  { %1598 = vmatpush1.bf16.msra.mxu0 %v2262_v7  ;;  %1639 = vmatpush1.bf16.msra.mxu1 %v2263_v38  ;;  %v1709_v7 = vld [vmem:[#allocation11 + $0x70] sm:$0xff]  ;;  %v1710_v38 = vld [vmem:[#allocation11 + $0x78] sm:$0xff] }
 0x6c9   :  { %1599 = vmatprep.subr.bf16.mxu0 %v2264_v39  ;;  %1640 = vmatprep.subr.bf16.mxu1 %v2265_v32  ;;  %v1997_v39 = vpack.c.bf16 %v1710_v38, %v1709_v7 }
 0x6cc   :  { %1600 = vmatpush1.bf16.msra.mxu0 %v2266_v12  ;;  %1641 = vmatpush1.bf16.msra.mxu1 %v2267_v21  ;;  %v3135_v21 = vld [vmem:[#allocation34_spill] sm:$0xff] }
 0x6cd   :  { %1975 = vmatprep.subr.bf16.mxu0 %v2385_v8 }
 0x782   :  { %v1501_v25 = vpop.f32.mrb[40].mxu0  ;;  %v1542_v9 = vpop.f32.mrb[40].mxu1 }
 0x783   :  { %v1549_v37 = vadd.f32 %v1501_v25, %v3130_v6  ;;  %v1551_v22 = vadd.f32 %v1542_v9, %v3131_v58  ;;  %v1503_v57 = vpop.f32.mrb[41].mxu0  ;;  %v1544_v34 = vpop.f32.mrb[41].mxu1  ;;  %v3136_v9 = vld [vmem:[#allocation35_spill] sm:$0xff] }
 0x784   :  { %v1550_v33 = vadd.f32 %v1503_v57, %v3132_v40  ;;  %v1552_v47 = vadd.f32 %v1544_v34, %v3133_v60  ;;  %v1505_v36 = vpop.f32.mrb[42].mxu0  ;;  %v1546_v50 = vpop.f32.mrb[42].mxu1  ;;  %v3138_v34 = vld [vmem:[#allocation37_spill] sm:$0xff] }
 0x785   :  { %v1916_v51 = vmul.f32 -1.442695, %v1549_v37  ;;  %v1506_v52 = vpop.f32.mrb[43].mxu0  ;;  %v1547_v53 = vpop.f32.mrb[43].mxu1  ;;  %v1918_v18 = vmul.f32 -1.442695, %v1551_v22 }
 0x786   :  { %v1917_v17 = vmul.f32 -1.442695, %v1550_v33  ;;  %v3137_v22 = vld [vmem:[#allocation36_spill] sm:$0xff] }
 0x787   :  { %2204 = vpow2.f32 %v1916_v51 }
 0x788   :  { %2206 = vpow2.f32 %v1917_v17 }
 0x789   :  { %2208 = vtanh.f32 %v1552_v47 }
 0x78a   :  { %2210 = vpow2.f32 %v1918_v18 }
 0x791   :  { %v2205_v19 = vpop.eup %2204 }
 0x792   :  { %v1562_v20 = vadd.f32 1.0, %v2205_v19  ;;  %v2207_v23 = vpop.eup %2206 }
 0x793   :  { %v1563_v24 = vadd.f32 1.0, %v2207_v23  ;;  %v2209_v26 = vpop.eup %2208 }
 0x794   :  { %2212 = vrcp.f32 %v1562_v20  ;;  %v2211_v27 = vpop.eup %2210 }
 0x795   :  { %2214 = vrcp.f32 %v1563_v24  ;;  %v1564_v29 = vadd.f32 1.0, %v2211_v27 }
 0x797   :  { %2216 = vrcp.f32 %v1564_v29 }
 0x79e   :  { %v2213_v54 = vpop.eup %2212 }
 0x79f   :  { %v1573_v28 = vmul.f32 %v2213_v54, %v2209_v26  ;;  %v2215_v62 = vpop.eup %2214 }
 0x7a0   :  { %v1572_v63 = vmul.f32 %v2215_v62, %v3041_v44  ;;  %v1985_v44 = vpack.c.bf16 %v1702_v45, %v1701_v43 }
 0x7a1   :  { %v2217_v2 = vpop.eup %2216 }
 0x7a2   :  { %v3069_v30 = vadd.f32 %v1573_v28, %v1572_v63 }
 0x7a4   :  { %2218 = vtanh.f32 %v3069_v30 }
 0x7ae   :  { %v2219_v31 = vpop.eup %2218 }
 0x7af   :  { %v1576_v3 = vmul.f32 %v2219_v31, %v2217_v2  ;;  %v1922_v31 = vld [vmem:[%s3090_s6] ss:$0 sm:$0xff] }
 0x7b1   :  { %v1584_v48 = vpack.c.bf16 %v1576_v3, %v1576_v3 }
 0x7b3   :  { %1618 = vmatmul.mubr.bf16.vlgmr.msra.gmra.mrb[44].mxu0 %v1584_v48  ;;  %1659 = vmatmul.mubr.bf16.vlgmr.msra.gmra.mrb[44].mxu1 %v1584_v48 }
 0x7b4   :  { %1977 = vmatpush3.bf16.msra.mxu0 %v1976_v5  ;;  %1972 = vmatprep.mubr.msk.f32.mxu0 %vm2386_vm0, %v3134_v59 }
 0x7b5   :  { %1978 = vmatprep.subr.bf16.mxu0 %v2385_v8 }
 0x7b8   :  { %1980 = vmatpush3.bf16.msra.mxu0 %v1979_v16 }
 0x7b9   :  { %1981 = vmatprep.subr.bf16.mxu0 %v2385_v8 }
 0x7bc   :  { %1983 = vmatpush3.bf16.msra.mxu0 %v1982_v41 }
 0x7bd   :  { %1984 = vmatprep.subr.bf16.mxu0 %v2385_v8 }
 0x7c0   :  { %1986 = vmatpush3.bf16.msra.mxu0 %v1985_v44 }
 0x7c1   :  { %1987 = vmatprep.subr.bf16.mxu0 %v2385_v8 }
 0x7c4   :  { %1989 = vmatpush3.bf16.msra.mxu0 %v1988_v55 }
 0x7c5   :  { %1990 = vmatprep.subr.bf16.mxu0 %v2385_v8 }
 0x7c8   :  { %1992 = vmatpush3.bf16.msra.mxu0 %v1991_v14 }
 0x7c9   :  { %1993 = vmatprep.subr.bf16.mxu0 %v2385_v8 }
 0x7cc   :  { %1995 = vmatpush3.bf16.msra.mxu0 %v1994_v61 }
 0x7cd   :  { %1996 = vmatprep.subr.bf16.mxu0 %v2385_v8 }
 0x7d0   :  { %1998 = vmatpush3.bf16.msra.mxu0 %v1997_v39 }
 0x886   :  { %v1619_v32 = vpop.f32.mrb[44].mxu0  ;;  %v1660_v12 = vpop.f32.mrb[44].mxu1 }
 0x887   :  { %v1667_v25 = vadd.f32 %v1619_v32, %v3135_v21  ;;  %v1669_v6 = vadd.f32 %v1660_v12, %v3136_v9  ;;  %v1621_v37 = vpop.f32.mrb[45].mxu0  ;;  %v1662_v58 = vpop.f32.mrb[45].mxu1 }
 0x888   :  { %v1668_v57 = vadd.f32 %v1621_v37, %v3137_v22  ;;  %v1670_v40 = vadd.f32 %v1662_v58, %v3138_v34  ;;  %v1623_v33 = vpop.f32.mrb[46].mxu0  ;;  %v1664_v60 = vpop.f32.mrb[46].mxu1 }
 0x889   :  { %v1919_v47 = vmul.f32 -1.442695, %v1667_v25  ;;  %v1624_v36 = vpop.f32.mrb[47].mxu0  ;;  %v1665_v50 = vpop.f32.mrb[47].mxu1  ;;  %v1921_v52 = vmul.f32 -1.442695, %v1669_v6 }
 0x88a   :  { %v1920_v51 = vmul.f32 -1.442695, %v1668_v57 }
 0x88b   :  { %2220 = vpow2.f32 %v1919_v47 }
 0x88c   :  { %2222 = vpow2.f32 %v1920_v51 }
 0x88d   :  { %2224 = vtanh.f32 %v1670_v40 }
 0x88e   :  { %2226 = vpow2.f32 %v1921_v52 }
 0x895   :  { %v2221_v53 = vpop.eup %2220 }
 0x896   :  { %v1680_v17 = vadd.f32 1.0, %v2221_v53  ;;  %v2223_v18 = vpop.eup %2222 }
 0x897   :  { %v1681_v19 = vadd.f32 1.0, %v2223_v18  ;;  %v2225_v20 = vpop.eup %2224 }
 0x898   :  { %2228 = vrcp.f32 %v1680_v17  ;;  %v2227_v23 = vpop.eup %2226 }
 0x899   :  { %2230 = vrcp.f32 %v1681_v19  ;;  %v1682_v54 = vadd.f32 1.0, %v2227_v23 }
 0x89b   :  { %2232 = vrcp.f32 %v1682_v54 }
 0x8a2   :  { %v2229_v24 = vpop.eup %2228 }
 0x8a3   :  { %v1691_v26 = vmul.f32 %v2229_v24, %v2225_v20  ;;  %v2231_v27 = vpop.eup %2230 }
 0x8a4   :  { %v1690_v28 = vmul.f32 %v2231_v27, %v3069_v30 }
 0x8a5   :  { %v2233_v29 = vpop.eup %2232 }
 0x8a6   :  { %v1692_v62 = vadd.f32 %v1691_v26, %v1690_v28 }
 0x8a8   :  { %2234 = vtanh.f32 %v1692_v62 }
 0x8b2   :  { %v2235_v63 = vpop.eup %2234 }
 0x8b3   :  { %v1694_v2 = vmul.f32 %v2235_v63, %v2233_v29 }
 0x8b5   :  { %1973 = vmatmul.mubr.f32.vlgmr.msra.gmra.mrb[48].mxu0 %v1694_v2 }
 0x988   :  { %v1784_v3 = vpop.f32.mrb[48].mxu0 }
 0x989   :  { %v1785_v48 = vadd.f32 %v1922_v31, %v1784_v3  ;;  %v1974_v49 = vpop.f32.mrb[49].mxu0 }
 0x98b   :  { %1788 = vst [vmem:[%s3091_s7] sm:$0xff] %v1785_v48 }
 0x98c   :  { %1793 = vsyncpa [#allocation7], 1 }
 0x98d   :  { %1794 = vsyncpa [#allocation9], 1 }
 0x98e   :  { %1795 = vsyncpa [#allocation12], 1 }

</bundles_post_ra>
